<compile_context>
chip_gen: v5e
topology: v5e:2x2
jax: 0.10.0
libtpu: 0.0.40
codegen_flags: <defaults>
</compile_context>

<pallas_src>
import jax
import jax.numpy as jnp
from jax.experimental import pallas as pl
from jax.experimental.pallas import tpu as pltpu

EMB_DIM = 300
OUT_DIM = 50       # conv output channels
LABEL_NUM = 4
KERNEL_T = 3       # temporal kernel size (padding = 1)


def _round_up(x, m):
    return ((x + m - 1) // m) * m


def cnn_kernel(ids_ref, tab_ref, wc_ref, bc_ref, wl_ref, bl_ref, o_ref):
    # ids_ref: (T+2, TB, 1) int32  time-major, time-padded token ids (pad id = 0)
    # tab_ref: (Vp, Ep)     bf16   embedding table (row 0 zeroed = padding_idx)
    # wc_ref : (KT, Ep, Cp) bf16   per-tap conv weights (transposed, zero-padded)
    # bc_ref : (1, Cp)      f32    conv bias
    # wl_ref : (Cp, Lp)     f32    linear weight (transposed, zero-padded)
    # bl_ref : (1, Lp)      f32    linear bias
    # o_ref  : (TB, Lp)     f32
    Tp2, TB, _ = ids_ref.shape
    T = Tp2 - (KERNEL_T - 1)
    Vp, Ep = tab_ref.shape
    Cp = wc_ref.shape[2]
    rows = Tp2 * TB

    # Fused Embedding lookup: one-hot(ids) @ table on the MXU (table is VMEM
    # resident).  Rows are time-major (r = t*TB + b) so each conv tap below is a
    # contiguous, sublane-aligned row range.
    ids = ids_ref[...].reshape(rows, 1)                        # leading-dim merge, lane dim intact
    eq = ids == jax.lax.broadcasted_iota(jnp.int32, (rows, Vp), 1)
    onehot = jnp.where(eq, 1.0, 0.0).astype(jnp.bfloat16)
    emb = jnp.dot(onehot, tab_ref[...], preferred_element_type=jnp.float32)
    emb = emb.astype(jnp.bfloat16)                             # exact: rows of the bf16 table

    # Conv2d(1, C, (3, E), padding=(1, 0)) as 3 accumulated matmuls; tap k reads
    # rows [k*TB, (k+T)*TB) of the time-major embeddings.
    acc = jnp.zeros((T * TB, Cp), jnp.float32)
    for k in range(KERNEL_T):                                  # static, unrolled
        win = emb[k * TB:(k + T) * TB, :]
        acc = acc + jnp.dot(win, wc_ref[k], preferred_element_type=jnp.float32)

    s = jnp.maximum(acc + bc_ref[...], 0.0)                    # bias + ReLU, (T*TB, Cp)
    pooled = jnp.max(s.reshape(T, TB, Cp), axis=0)             # max-pool over time -> (TB, Cp)

    y = jnp.dot(pooled, wl_ref[...], preferred_element_type=jnp.float32) + bl_ref[...]
    o_ref[...] = y                                             # (TB, Lp) lane-dense store


def cnn_forward(x_ids, emb_table, conv_w, conv_b, lin_w, lin_b):
    B, T = x_ids.shape
    V, E = emb_table.shape
    C = conv_w.shape[0]
    L = lin_w.shape[0]
    Tp2 = T + (KERNEL_T - 1)

    Vp = _round_up(V, 128)
    Ep = _round_up(E, 128)
    Cp = _round_up(C, 128)
    Lp = _round_up(L, 128)

    # TODO(synk): the fused one-hot gather assumes the padded bf16 table fits in
    # VMEM (fine for small vocab); for large vocab keep the table HBM-resident
    # (memory_space=pl.ANY) with double-buffered row DMAs instead.

    # Batch tile: full padded batch for small B (single grid step, full-dim
    # blocks); else 256 (multiple of 128 so the time-major ids block is lane
    # legal, >=2 grid steps for v7x megacore, 2048 MXU rows per tap at T=8).
    B16 = _round_up(B, 16)
    TB = B16 if B16 <= 256 else 256
    B_pad = _round_up(B, TB)

    # Time halo + batch padding on the int32 ids only (pad id 0 == padding_idx,
    # whose embedding row is zero) -> no activation padding/copy in HBM.
    ids_tm = jnp.pad(x_ids.astype(jnp.int32).T, ((1, 1), (0, B_pad - B)))  # (Tp2, B_pad)
    ids_tm = ids_tm[:, :, None]                                            # (Tp2, B_pad, 1)

    # Parameters: enforce padding_idx (zero row 0), transpose / zero-pad to
    # matmul form.  All padding is zeros -> no effect on the result.
    tab = jnp.pad(emb_table.at[0].set(0.0), ((0, Vp - V), (0, Ep - E))).astype(jnp.bfloat16)
    wc = jnp.transpose(conv_w[:, 0, :, :], (1, 2, 0))                      # (KT, E, C); wc[k][e,c]=conv_w[c,0,k,e]
    wc = jnp.pad(wc, ((0, 0), (0, Ep - E), (0, Cp - C))).astype(jnp.bfloat16)
    bc = jnp.pad(conv_b, (0, Cp - C)).reshape(1, Cp).astype(jnp.float32)
    wl = jnp.pad(lin_w.T, ((0, Cp - C), (0, Lp - L))).astype(jnp.float32)  # (Cp, Lp)
    bl = jnp.pad(lin_b, (0, Lp - L)).reshape(1, Lp).astype(jnp.float32)

    out = pl.pallas_call(
        cnn_kernel,
        out_shape=jax.ShapeDtypeStruct((B_pad, Lp), jnp.float32),
        grid=(B_pad // TB,),
        in_specs=[
            pl.BlockSpec((Tp2, TB, 1), lambda b: (0, b, 0)),
            pl.BlockSpec((Vp, Ep), lambda b: (0, 0)),
            pl.BlockSpec((KERNEL_T, Ep, Cp), lambda b: (0, 0, 0)),
            pl.BlockSpec((1, Cp), lambda b: (0, 0)),
            pl.BlockSpec((Cp, Lp), lambda b: (0, 0)),
            pl.BlockSpec((1, Lp), lambda b: (0, 0)),
        ],
        out_specs=pl.BlockSpec((TB, Lp), lambda b: (b, 0)),
        compiler_params=pltpu.CompilerParams(
            dimension_semantics=("parallel",),
            vmem_limit_bytes=32 * 1024 * 1024,
        ),
    )(ids_tm, tab, wc, bc, wl, bl)

    return out[:B, :L]


def reference_forward(x_ids, emb_table, conv_w, conv_b, lin_w, lin_b):
    """Pure-JAX f32 reference mirroring the PyTorch forward."""
    T = x_ids.shape[1]
    emb_table = emb_table.at[0].set(0.0)                               # padding_idx=0
    emb = emb_table[x_ids]                                             # (B, T, E)
    emb_pad = jnp.pad(emb, ((0, 0), (1, 1), (0, 0)))
    windows = jnp.stack([emb_pad[:, k:k + T, :] for k in range(KERNEL_T)], axis=2)
    conv = jnp.einsum("btke,coke->bct", windows, conv_w) + conv_b[None, :, None]
    relu = jnp.maximum(conv, 0.0)
    pooled = jnp.max(relu, axis=-1)                                    # (B, C)
    return pooled @ lin_w.T + lin_b                                    # (B, L)


if __name__ == "__main__":
    key = jax.random.PRNGKey(0)
    k_emb, k_cw, k_cb, k_lw, k_lb, k_x = jax.random.split(key, 6)

    vocab_size = 100
    B, T = 2, 8

    # deterministic parameter init (shapes from the module's __init__)
    emb_table = jax.random.normal(k_emb, (vocab_size, EMB_DIM), jnp.float32) * 0.1
    emb_table = emb_table.at[0].set(0.0)                               # padding_idx=0
    conv_w = jax.random.normal(k_cw, (OUT_DIM, 1, KERNEL_T, EMB_DIM), jnp.float32) * 0.05
    conv_b = jax.random.normal(k_cb, (OUT_DIM,), jnp.float32) * 0.05
    lin_w = jax.random.normal(k_lw, (LABEL_NUM, OUT_DIM), jnp.float32) * 0.1
    lin_b = jax.random.normal(k_lb, (LABEL_NUM,), jnp.float32) * 0.1

    x = jax.random.randint(k_x, (B, T), 0, vocab_size, dtype=jnp.int32)

    y = jax.jit(cnn_forward)(x, emb_table, conv_w, conv_b, lin_w, lin_b)
    y = jax.block_until_ready(y)

    y_ref = reference_forward(x, emb_table, conv_w, conv_b, lin_w, lin_b)
    assert y.shape == (B, LABEL_NUM)
    # bf16 inputs with f32 accumulation -> loosened tolerance vs the f32 reference
    assert jnp.allclose(y, y_ref, atol=2e-2, rtol=2e-2), (y, y_ref)

    print("KERNEL_OK")
</pallas_src>

<mosaic_0001>
module attributes {stable_mosaic.version = 11 : i64} {
  func.func @cnn_kernel(%arg0: i32, %arg1: memref<10x16x1xi32, #tpu.memory_space<vmem>>, %arg2: memref<128x384xbf16, #tpu.memory_space<vmem>>, %arg3: memref<3x384x128xbf16, #tpu.memory_space<vmem>>, %arg4: memref<1x128xf32, #tpu.memory_space<vmem>>, %arg5: memref<128x128xf32, #tpu.memory_space<vmem>>, %arg6: memref<1x128xf32, #tpu.memory_space<vmem>>, %arg7: memref<16x128xf32, #tpu.memory_space<vmem>>) attributes {dimension_semantics = [#tpu.dimension_semantics<parallel>], iteration_bounds = array<i64: 1>, scalar_prefetch = 0 : i64, scratch_operands = 0 : i64, tpu.core_type = #tpu.core_type<tc>, window_params = [{transform_indices = @transform_0, window_bounds = array<i64: 10, 16, 1>}, {pipeline_mode = #tpu.pipeline_mode<synchronous>, transform_indices = @transform_1, window_bounds = array<i64: 128, 384>}, {pipeline_mode = #tpu.pipeline_mode<synchronous>, transform_indices = @transform_2, window_bounds = array<i64: 3, 384, 128>}, {pipeline_mode = #tpu.pipeline_mode<synchronous>, transform_indices = @transform_3, window_bounds = array<i64: 1, 128>}, {pipeline_mode = #tpu.pipeline_mode<synchronous>, transform_indices = @transform_4, window_bounds = array<i64: 128, 128>}, {pipeline_mode = #tpu.pipeline_mode<synchronous>, transform_indices = @transform_5, window_bounds = array<i64: 1, 128>}, {transform_indices = @transform_6, window_bounds = array<i64: 16, 128>}]} {
    %c0 = arith.constant 0 : index
    %c0_0 = arith.constant 0 : index
    %c0_1 = arith.constant 0 : index
    %0 = vector.load %arg1[%c0, %c0_0, %c0_1] : memref<10x16x1xi32, #tpu.memory_space<vmem>>, vector<10x16x1xi32>
    %1 = vector.shape_cast %0 : vector<10x16x1xi32> to vector<160x1xi32>
    %2 = tpu.iota {dimensions = array<i32: 1>} : vector<160x128xi32>
    %3 = vector.broadcast %1 : vector<160x1xi32> to vector<160x128xi32>
    %4 = arith.cmpi eq, %3, %2 : vector<160x128xi32>
    %cst = arith.constant 1.000000e+00 : f32
    %cst_2 = arith.constant 0.000000e+00 : f32
    %5 = vector.broadcast %cst : f32 to vector<160x128xf32>
    %6 = vector.broadcast %cst_2 : f32 to vector<160x128xf32>
    %7 = arith.select %4, %5, %6 : vector<160x128xi1>, vector<160x128xf32>
    %8 = arith.truncf %7 : vector<160x128xf32> to vector<160x128xbf16>
    %c0_3 = arith.constant 0 : index
    %c0_4 = arith.constant 0 : index
    %9 = vector.load %arg2[%c0_3, %c0_4] : memref<128x384xbf16, #tpu.memory_space<vmem>>, vector<128x384xbf16>
    %cst_5 = arith.constant dense<0.000000e+00> : vector<160x384xf32>
    %10 = tpu.matmul %8, %9, %cst_5 {dimension_numbers = #tpu.dot_dimension_numbers<[1], [0], [0], [1], [0, 0, 1, 1], [], []>} : vector<160x128xbf16>, vector<128x384xbf16>, vector<160x384xf32> -> vector<160x384xf32>
    %11 = arith.truncf %10 : vector<160x384xf32> to vector<160x384xbf16>
    %cst_6 = arith.constant 0.000000e+00 : f32
    %12 = vector.broadcast %cst_6 : f32 to vector<128x128xf32>
    %13 = vector.extract_strided_slice %11 {offsets = [0, 0], sizes = [128, 384], strides = [1, 1]} : vector<160x384xbf16> to vector<128x384xbf16>
    %c0_7 = arith.constant 0 : index
    %c0_8 = arith.constant 0 : index
    %c0_9 = arith.constant 0 : index
    %14 = vector.load %arg3[%c0_7, %c0_8, %c0_9] : memref<3x384x128xbf16, #tpu.memory_space<vmem>>, vector<1x384x128xbf16>
    %15 = vector.shape_cast %14 : vector<1x384x128xbf16> to vector<384x128xbf16>
    %cst_10 = arith.constant dense<0.000000e+00> : vector<128x128xf32>
    %16 = tpu.matmul %13, %15, %cst_10 {dimension_numbers = #tpu.dot_dimension_numbers<[1], [0], [0], [1], [0, 0, 1, 1], [], []>} : vector<128x384xbf16>, vector<384x128xbf16>, vector<128x128xf32> -> vector<128x128xf32>
    %17 = arith.addf %12, %16 : vector<128x128xf32>
    %18 = vector.extract_strided_slice %11 {offsets = [16, 0], sizes = [128, 384], strides = [1, 1]} : vector<160x384xbf16> to vector<128x384xbf16>
    %c1 = arith.constant 1 : index
    %c0_11 = arith.constant 0 : index
    %c0_12 = arith.constant 0 : index
    %19 = vector.load %arg3[%c1, %c0_11, %c0_12] : memref<3x384x128xbf16, #tpu.memory_space<vmem>>, vector<1x384x128xbf16>
    %20 = vector.shape_cast %19 : vector<1x384x128xbf16> to vector<384x128xbf16>
    %cst_13 = arith.constant dense<0.000000e+00> : vector<128x128xf32>
    %21 = tpu.matmul %18, %20, %cst_13 {dimension_numbers = #tpu.dot_dimension_numbers<[1], [0], [0], [1], [0, 0, 1, 1], [], []>} : vector<128x384xbf16>, vector<384x128xbf16>, vector<128x128xf32> -> vector<128x128xf32>
    %22 = arith.addf %17, %21 : vector<128x128xf32>
    %23 = vector.extract_strided_slice %11 {offsets = [32, 0], sizes = [128, 384], strides = [1, 1]} : vector<160x384xbf16> to vector<128x384xbf16>
    %c2 = arith.constant 2 : index
    %c0_14 = arith.constant 0 : index
    %c0_15 = arith.constant 0 : index
    %24 = vector.load %arg3[%c2, %c0_14, %c0_15] : memref<3x384x128xbf16, #tpu.memory_space<vmem>>, vector<1x384x128xbf16>
    %25 = vector.shape_cast %24 : vector<1x384x128xbf16> to vector<384x128xbf16>
    %cst_16 = arith.constant dense<0.000000e+00> : vector<128x128xf32>
    %26 = tpu.matmul %23, %25, %cst_16 {dimension_numbers = #tpu.dot_dimension_numbers<[1], [0], [0], [1], [0, 0, 1, 1], [], []>} : vector<128x384xbf16>, vector<384x128xbf16>, vector<128x128xf32> -> vector<128x128xf32>
    %27 = arith.addf %22, %26 : vector<128x128xf32>
    %c0_17 = arith.constant 0 : index
    %c0_18 = arith.constant 0 : index
    %28 = vector.load %arg4[%c0_17, %c0_18] : memref<1x128xf32, #tpu.memory_space<vmem>>, vector<1x128xf32>
    %29 = vector.broadcast %28 : vector<1x128xf32> to vector<128x128xf32>
    %30 = arith.addf %27, %29 : vector<128x128xf32>
    %cst_19 = arith.constant 0.000000e+00 : f32
    %31 = vector.broadcast %cst_19 : f32 to vector<128x128xf32>
    %32 = arith.maximumf %30, %31 : vector<128x128xf32>
    %33 = vector.shape_cast %32 : vector<128x128xf32> to vector<8x16x128xf32>
    %cst_20 = arith.constant dense<0xFF800000> : vector<16x128xf32>
    %34 = vector.multi_reduction <maximumf>, %33, %cst_20 [0] : vector<8x16x128xf32> to vector<16x128xf32>
    %c0_21 = arith.constant 0 : index
    %c0_22 = arith.constant 0 : index
    %35 = vector.load %arg5[%c0_21, %c0_22] : memref<128x128xf32, #tpu.memory_space<vmem>>, vector<128x128xf32>
    %cst_23 = arith.constant dense<0.000000e+00> : vector<16x128xf32>
    %36 = tpu.matmul %34, %35, %cst_23 {dimension_numbers = #tpu.dot_dimension_numbers<[1], [0], [0], [1], [0, 0, 1, 1], [], []>} : vector<16x128xf32>, vector<128x128xf32>, vector<16x128xf32> -> vector<16x128xf32>
    %c0_24 = arith.constant 0 : index
    %c0_25 = arith.constant 0 : index
    %37 = vector.load %arg6[%c0_24, %c0_25] : memref<1x128xf32, #tpu.memory_space<vmem>>, vector<1x128xf32>
    %38 = vector.broadcast %37 : vector<1x128xf32> to vector<16x128xf32>
    %39 = arith.addf %36, %38 : vector<16x128xf32>
    %c0_26 = arith.constant 0 : index
    %c0_27 = arith.constant 0 : index
    %40 = vector.load %arg7[%c0_26, %c0_27] : memref<16x128xf32, #tpu.memory_space<vmem>>, vector<16x128xf32>
    tpu.vector_store %arg7[%c0_26, %c0_27], %39 {strides = array<i32>} : memref<16x128xf32, #tpu.memory_space<vmem>>, vector<16x128xf32>,
    return
  }
  func.func @transform_0(%arg0: i32) -> (i32, i32, i32) {
    %c0_i32 = arith.constant 0 : i32
    %c0_i32_0 = arith.constant 0 : i32
    %c0_i32_1 = arith.constant 0 : i32
    return %c0_i32, %arg0, %c0_i32_0 : i32, i32, i32
  }
  func.func @transform_1(%arg0: i32) -> (i32, i32) {
    %c0_i32 = arith.constant 0 : i32
    %c0_i32_0 = arith.constant 0 : i32
    %c0_i32_1 = arith.constant 0 : i32
    return %c0_i32, %c0_i32_0 : i32, i32
  }
  func.func @transform_2(%arg0: i32) -> (i32, i32, i32) {
    %c0_i32 = arith.constant 0 : i32
    %c0_i32_0 = arith.constant 0 : i32
    %c0_i32_1 = arith.constant 0 : i32
    %c0_i32_2 = arith.constant 0 : i32
    return %c0_i32, %c0_i32_0, %c0_i32_1 : i32, i32, i32
  }
  func.func @transform_3(%arg0: i32) -> (i32, i32) {
    %c0_i32 = arith.constant 0 : i32
    %c0_i32_0 = arith.constant 0 : i32
    %c0_i32_1 = arith.constant 0 : i32
    return %c0_i32, %c0_i32_0 : i32, i32
  }
  func.func @transform_4(%arg0: i32) -> (i32, i32) {
    %c0_i32 = arith.constant 0 : i32
    %c0_i32_0 = arith.constant 0 : i32
    %c0_i32_1 = arith.constant 0 : i32
    return %c0_i32, %c0_i32_0 : i32, i32
  }
  func.func @transform_5(%arg0: i32) -> (i32, i32) {
    %c0_i32 = arith.constant 0 : i32
    %c0_i32_0 = arith.constant 0 : i32
    %c0_i32_1 = arith.constant 0 : i32
    return %c0_i32, %c0_i32_0 : i32, i32
  }
  func.func @transform_6(%arg0: i32) -> (i32, i32) {
    %c0_i32 = arith.constant 0 : i32
    %c0_i32_0 = arith.constant 0 : i32
    return %arg0, %c0_i32 : i32, i32
  }
}

</mosaic_0001>

<bundles_post_ra>
// kernel: cnn_forward.1
= control target key start
LH: loop header
LB: loop body
LE: loop exit
PB: predicated region body
PF: predicated region fallthrough
CT: control target
= control target key end

     0   :  { %v2469_v0 = vmov 0   ;;  %s3494_s0 = inlined_call_operand.vmem [shape: s32[10,16,1], index: 0, kind: input, shape index: {}]   ;;  %s3495_s1 = inlined_call_operand.vmem [shape: bf16[128,384], index: 1, kind: input, shape index: {}]   ;;  %s3496_s2 = inlined_call_operand.vmem [shape: bf16[3,384,128], index: 2, kind: input, shape index: {}]   ;;  %s3497_s3 = inlined_call_operand.vmem [shape: f32[1,128], index: 3, kind: input, shape index: {}]   ;;  %s3498_s4 = inlined_call_operand.vmem [shape: f32[128,128], index: 4, kind: input, shape index: {}]   ;;  %s3499_s5 = inlined_call_operand.vmem [shape: f32[1,128], index: 5, kind: input, shape index: {}]   ;;  %s3500_s6 = inlined_call_operand.vmem [shape: f32[16,128], index: 6, kind: output, shape index: {}]  }
   0x1   :  { %2465 = vset.pattern.permute.xlu1 %v2469_v0  ;;  %2464 = vset.pattern.permute.xlu0 %v2469_v0  ;;  %v25_v1 = vld [vmem:[%s3494_s0 + $0x10] sm:$0xff]  ;;  %v23_v2 = vld [vmem:[%s3494_s0] sm:$0xff]  ;;  %v26_v4 = vld [vmem:[%s3494_s0 + $0x18] sm:$0xff] }
   0x2   :  { %52 = vperm.xlu1 %2465, %v25_v1   ;;  %46 = vperm.xlu0 %2464, %v23_v2   ;;  %v27_v3 = vld [vmem:[%s3494_s0 + $0x20] sm:$0xff]  ;;  %v24_v5 = vld [vmem:[%s3494_s0 + $0x8] sm:$0xff]  ;;  %v30_v7 = vld [vmem:[%s3494_s0 + $0x38] sm:$0xff] }
   0x3   :  { %2466 = vset.pattern.permute.xlu2 %v2469_v0  ;;  %v28_v6 = vld [vmem:[%s3494_s0 + $0x28] sm:$0xff]  ;;  %v29_v8 = vld [vmem:[%s3494_s0 + $0x30] sm:$0xff]  ;;  %v31_v9 = vld [vmem:[%s3494_s0 + $0x40] sm:$0xff] }
   0x4   :  { %58 = vperm.xlu2 %2466, %v27_v3   ;;  %v1912_v10 = vld [vmem:[%s3495_s1 + $0xa8] sm:$0xf]  ;;  %v2388_v11 = vld [vmem:[%s3495_s1 + $0xb0] sm:$0xf0]  ;;  %v2387_v13 = vld [vmem:[%s3495_s1 + $0xac] sm:$0xf] }
   0x5   :  { %v1913_v12 = vor.u32 %v2388_v11, %v1912_v10  ;;  %v1914_v14 = vld [vmem:[%s3495_s1 + $0xb4] sm:$0xf0]  ;;  %v1920_v15 = vld [vmem:[%s3495_s1 + $0xb0] sm:$0xf]  ;;  %v2389_v17 = vld [vmem:[%s3495_s1 + $0xb8] sm:$0xf0] }
   0x6   :  { %v1917_v16 = vor.u32 %v2387_v13, %v1914_v14  ;;  %v1900_v18 = vld [vmem:[%s3495_s1 + $0x90] sm:$0xf]  ;;  %v2385_v19 = vld [vmem:[%s3495_s1 + $0x98] sm:$0xf0]  ;;  %v1921_v20 = vor.u32 %v2389_v17, %v1920_v15  ;;  %v2384_v22 = vld [vmem:[%s3495_s1 + $0x94] sm:$0xf] }
   0x7   :  { %315 = vmatpush.bf16.msra.mxu0 %v1913_v12  ;;  %v1901_v21 = vor.u32 %v2385_v19, %v1900_v18  ;;  %v1902_v23 = vld [vmem:[%s3495_s1 + $0x9c] sm:$0xf0]  ;;  %v1908_v24 = vld [vmem:[%s3495_s1 + $0x98] sm:$0xf]  ;;  %v2386_v25 = vld [vmem:[%s3495_s1 + $0xa0] sm:$0xf0] }
   0x8   :  { %374 = vmatpush.bf16.msra.mxu1 %v1917_v16  ;;  %v1888_v26 = vld [vmem:[%s3495_s1 + $0x78] sm:$0xf]  ;;  %v2382_v27 = vld [vmem:[%s3495_s1 + $0x80] sm:$0xf0]  ;;  %v33_v28 = vld [vmem:[%s3494_s0 + $0x50] sm:$0xff]  ;;  %433 = vmatpush.bf16.msra.mxu2 %v1921_v20  ;;  %v1905_v30 = vor.u32 %v2384_v22, %v1902_v23  ;;  %v1909_v31 = vor.u32 %v2386_v25, %v1908_v24 }
   0x9   :  { %v32_v29 = vld [vmem:[%s3494_s0 + $0x48] sm:$0xff]  ;;  %v2381_v32 = vld [vmem:[%s3495_s1 + $0x7c] sm:$0xf]  ;;  %v1896_v34 = vld [vmem:[%s3495_s1 + $0x80] sm:$0xf]  ;;  %v1889_v37 = vor.u32 %v2382_v27, %v1888_v26 }
   0xa   :  { %55 = vperm.xlu1 %2465, %v26_v4   ;;  %49 = vperm.xlu0 %2464, %v24_v5   ;;  %v1890_v33 = vld [vmem:[%s3495_s1 + $0x84] sm:$0xf0]  ;;  %v2383_v35 = vld [vmem:[%s3495_s1 + $0x88] sm:$0xf0]  ;;  %v34_v36 = vld [vmem:[%s3494_s0 + $0x58] sm:$0xff] }
   0xb   :  { %316 = vmatpush.bf16.msra.mxu0 %v1901_v21  ;;  %v1876_v38 = vld [vmem:[%s3495_s1 + $0x60] sm:$0xf]  ;;  %v2379_v39 = vld [vmem:[%s3495_s1 + $0x68] sm:$0xf0]  ;;  %v1893_v40 = vor.u32 %v2381_v32, %v1890_v33  ;;  %v1897_v41 = vor.u32 %v2383_v35, %v1896_v34  ;;  %v2378_v42 = vld [vmem:[%s3495_s1 + $0x64] sm:$0xf] }
   0xc   :  { %61 = vperm.xlu2 %2466, %v28_v6   ;;  %375 = vmatpush.bf16.msra.mxu1 %v1905_v30  ;;  %v1878_v43 = vld [vmem:[%s3495_s1 + $0x6c] sm:$0xf0]  ;;  %v1884_v44 = vld [vmem:[%s3495_s1 + $0x68] sm:$0xf]  ;;  %v2380_v45 = vld [vmem:[%s3495_s1 + $0x70] sm:$0xf0]  ;;  %v1877_v46 = vor.u32 %v2379_v39, %v1876_v38  ;;  %v43_v30 = vlaneseq }
   0xd   :  { %434 = vmatpush.bf16.msra.mxu2 %v1909_v31  ;;  %v36_v47 = vld [vmem:[%s3494_s0 + $0x68] sm:$0xff]  ;;  %v35_v48 = vld [vmem:[%s3494_s0 + $0x60] sm:$0xff]  ;;  %v1881_v49 = vor.u32 %v2378_v42, %v1878_v43  ;;  %v1885_v50 = vor.u32 %v2380_v45, %v1884_v44  ;;  %v37_v51 = vld [vmem:[%s3494_s0 + $0x70] sm:$0xff]  ;;  %v2470_v33 = vmov 1.0|1.0  }
   0xe   :  { %v39_v52 = vld [vmem:[%s3494_s0 + $0x80] sm:$0xff]  ;;  %v38_v53 = vld [vmem:[%s3494_s0 + $0x78] sm:$0xff]  ;;  %v40_v54 = vld [vmem:[%s3494_s0 + $0x88] sm:$0xff]  ;;  %v2710_v31 = vand.u32 127, %v43_v30 }
   0xf   :  { %317 = vmatpush.bf16.msra.mxu0 %v1889_v37  ;;  %v42_v55 = vld [vmem:[%s3494_s0 + $0x98] sm:$0xff]  ;;  %v41_v56 = vld [vmem:[%s3494_s0 + $0x90] sm:$0xff]  ;;  %v1864_v57 = vld [vmem:[%s3495_s1 + $0x48] sm:$0xf] }
  0x10   :  { %376 = vmatpush.bf16.msra.mxu1 %v1893_v40  ;;  %v2376_v58 = vld [vmem:[%s3495_s1 + $0x50] sm:$0xf0]  ;;  %v2375_v59 = vld [vmem:[%s3495_s1 + $0x4c] sm:$0xf]  ;;  %v1866_v61 = vld [vmem:[%s3495_s1 + $0x54] sm:$0xf0] }
  0x11   :  { %435 = vmatpush.bf16.msra.mxu2 %v1897_v41  ;;  %v1865_v60 = vor.u32 %v2376_v58, %v1864_v57  ;;  %v1872_v62 = vld [vmem:[%s3495_s1 + $0x50] sm:$0xf]  ;;  %v2377_v63 = vld [vmem:[%s3495_s1 + $0x58] sm:$0xf0]  ;;  %v1869_v0 = vor.u32 %v2375_v59, %v1866_v61  ;;  %v2372_v4 = vld [vmem:[%s3495_s1 + $0x34] sm:$0xf] }
  0x12   :  { %67 = vperm.xlu1 %2465, %v30_v7   ;;  %64 = vperm.xlu0 %2464, %v29_v8   ;;  %v1873_v1 = vor.u32 %v2377_v63, %v1872_v62  ;;  %v1852_v2 = vld [vmem:[%s3495_s1 + $0x30] sm:$0xf]  ;;  %v2373_v3 = vld [vmem:[%s3495_s1 + $0x38] sm:$0xf0]  ;;  %v1854_v6 = vld [vmem:[%s3495_s1 + $0x3c] sm:$0xf0] }
  0x13   :  { %318 = vmatpush.bf16.msra.mxu0 %v1877_v46  ;;  %v1853_v5 = vor.u32 %v2373_v3, %v1852_v2  ;;  %v1860_v7 = vld [vmem:[%s3495_s1 + $0x38] sm:$0xf]  ;;  %v2374_v8 = vld [vmem:[%s3495_s1 + $0x40] sm:$0xf0]  ;;  %v2369_v13 = vld [vmem:[%s3495_s1 + $0x1c] sm:$0xf] }
  0x14   :  { %70 = vperm.xlu2 %2466, %v31_v9   ;;  %377 = vmatpush.bf16.msra.mxu1 %v1881_v49  ;;  %v1857_v9 = vor.u32 %v2372_v4, %v1854_v6  ;;  %v1861_v10 = vor.u32 %v2374_v8, %v1860_v7  ;;  %v1840_v11 = vld [vmem:[%s3495_s1 + $0x18] sm:$0xf]  ;;  %v2370_v12 = vld [vmem:[%s3495_s1 + $0x20] sm:$0xf0]  ;;  %v1842_v15 = vld [vmem:[%s3495_s1 + $0x24] sm:$0xf0] }
  0x15   :  { %436 = vmatpush.bf16.msra.mxu2 %v1885_v50  ;;  %v1841_v14 = vor.u32 %v2370_v12, %v1840_v11  ;;  %v1848_v16 = vld [vmem:[%s3495_s1 + $0x20] sm:$0xf]  ;;  %v2371_v17 = vld [vmem:[%s3495_s1 + $0x28] sm:$0xf0]  ;;  %v1845_v18 = vor.u32 %v2369_v13, %v1842_v15  ;;  %v2366_v22 = vld [vmem:[%s3495_s1 + $0x4] sm:$0xf] }
  0x16   :  { %v1849_v19 = vor.u32 %v2371_v17, %v1848_v16  ;;  %v1828_v20 = vld [vmem:[%s3495_s1] sm:$0xf]  ;;  %v2367_v21 = vld [vmem:[%s3495_s1 + $0x8] sm:$0xf0]  ;;  %v1830_v24 = vld [vmem:[%s3495_s1 + $0xc] sm:$0xf0] }
  0x17   :  { %319 = vmatpush.bf16.msra.mxu0 %v1865_v60  ;;  %v1829_v23 = vor.u32 %v2367_v21, %v1828_v20  ;;  %v1836_v25 = vld [vmem:[%s3495_s1 + $0x8] sm:$0xf]  ;;  %v2368_v26 = vld [vmem:[%s3495_s1 + $0x10] sm:$0xf0]  ;;  %v1833_v27 = vor.u32 %v2366_v22, %v1830_v24  ;;  %v2405_v44 = vld [vmem:[%s3496_s2 + $0x78] sm:$0xff] }
  0x18   :  { %378 = vmatpush.bf16.msra.mxu1 %v1869_v0  ;;  %v2420_v49 = vld [vmem:[%s3496_s2 + $0xf0] sm:$0xff]  ;;  %v2437_v50 = vld [vmem:[%s3496_s2 + $0x178] sm:$0xff]  ;;  %v2403_v57 = vld [vmem:[%s3496_s2 + $0x68] sm:$0xff] }
  0x19   :  { %437 = vmatpush.bf16.msra.mxu2 %v1873_v1  ;;  %v2435_v59 = vld [vmem:[%s3496_s2 + $0x168] sm:$0xff]  ;;  %v2417_v60 = vld [vmem:[%s3496_s2 + $0xd8] sm:$0xff]  ;;  %v2394_v61 = vld [vmem:[%s3496_s2 + $0x20] sm:$0xff] }
  0x1a   :  { %76 = vperm.xlu1 %2465, %v33_v28   ;;  %73 = vperm.xlu0 %2464, %v32_v29   ;;  %v1837_v28 = vor.u32 %v2368_v26, %v1836_v25  ;;  %v2402_v62 = vld [vmem:[%s3496_s2 + $0x60] sm:$0xff]  ;;  %v2416_v1 = vld [vmem:[%s3496_s2 + $0xd0] sm:$0xff]  ;;  %v2393_v2 = vld [vmem:[%s3496_s2 + $0x18] sm:$0xff] }
  0x1b   :  { %320 = vmatpush.bf16.msra.mxu0 %v1853_v5  ;;  %v2434_v0 = vld [vmem:[%s3496_s2 + $0x160] sm:$0xff]  ;;  %v2401_v3 = vld [vmem:[%s3496_s2 + $0x58] sm:$0xff]  ;;  %v2415_v5 = vld [vmem:[%s3496_s2 + $0xc8] sm:$0xff] }
  0x1c   :  { %79 = vperm.xlu2 %2466, %v34_v36   ;;  %379 = vmatpush.bf16.msra.mxu1 %v1857_v9  ;;  %v2433_v4 = vld [vmem:[%s3496_s2 + $0x158] sm:$0xff]  ;;  %v2392_v6 = vld [vmem:[%s3496_s2 + $0x10] sm:$0xff]  ;;  %v2414_v9 = vld [vmem:[%s3496_s2 + $0xc0] sm:$0xff] }
  0x1d   :  { %438 = vmatpush.bf16.msra.mxu2 %v1861_v10  ;;  %v2400_v7 = vld [vmem:[%s3496_s2 + $0x50] sm:$0xff]  ;;  %v2391_v10 = vld [vmem:[%s3496_s2 + $0x8] sm:$0xff]  ;;  %v2390_v15 = vld [vmem:[%s3496_s2] sm:$0xff] }
  0x1e   :  { %v2432_v8 = vld [vmem:[%s3496_s2 + $0x150] sm:$0xff]  ;;  %v2399_v11 = vld [vmem:[%s3496_s2 + $0x48] sm:$0xff]  ;;  %v2398_v16 = vld [vmem:[%s3496_s2 + $0x40] sm:$0xff] }
  0x1f   :  { %321 = vmatpush.bf16.msra.mxu0 %v1841_v14  ;;  %v2431_v13 = vld [vmem:[%s3496_s2 + $0x148] sm:$0xff]  ;;  %v2429_v20 = vld [vmem:[%s3496_s2 + $0x138] sm:$0xff] }
  0x20   :  { %380 = vmatpush.bf16.msra.mxu1 %v1845_v18 }
  0x21   :  { %439 = vmatpush.bf16.msra.mxu2 %v1849_v19  ;;  %v2430_v19 = vld [vmem:[%s3496_s2 + $0x140] sm:$0xff] }
  0x22   :  { %85 = vperm.xlu1 %2465, %v36_v47   ;;  %82 = vperm.xlu0 %2464, %v35_v48   ;;  %v2421_v47 = vld [vmem:[%s3496_s2 + $0xf8] sm:$0xff] }
  0x23   :  { %322 = vmatpush.bf16.msra.mxu0 %v1829_v23  ;;  %901 = vmatpush.bf16.msra.mxu3 %v2421_v47  ;;  %v2397_v48 = vld [vmem:[%s3496_s2 + $0x38] sm:$0xff] }
  0x24   :  { %88 = vperm.xlu2 %2466, %v37_v51   ;;  %381 = vmatpush.bf16.msra.mxu1 %v1833_v27  ;;  %v2419_v51 = vld [vmem:[%s3496_s2 + $0xe8] sm:$0xff] }
  0x25   :  { %440 = vmatpush.bf16.msra.mxu2 %v1837_v28 }
  0x27   :  { %902 = vmatpush.bf16.msra.mxu3 %v2420_v49  ;;  %999 = vmatpush.bf16.msrb.mxu0 %v2437_v50 }
  0x28   :  { %1208 = vmatpush.bf16.msrb.mxu1 %v2397_v48 }
  0x29   :  { %1257 = vmatpush.bf16.msrb.mxu2 %v2405_v44 }
  0x2a   :  { %94 = vperm.xlu1 %2465, %v39_v52   ;;  %91 = vperm.xlu0 %2464, %v38_v53   ;;  %v2396_v52 = vld [vmem:[%s3496_s2 + $0x30] sm:$0xff] }
  0x2b   :  { %v2404_v53 = vld [vmem:[%s3496_s2 + $0x70] sm:$0xff]  ;;  %903 = vmatpush.bf16.msra.mxu3 %v2419_v51 }
  0x2c   :  { %97 = vperm.xlu2 %2466, %v40_v54   ;;  %1209 = vmatpush.bf16.msrb.mxu1 %v2396_v52  ;;  %v2436_v54 = vld [vmem:[%s3496_s2 + $0x170] sm:$0xff] }
  0x2d   :  { %1258 = vmatpush.bf16.msrb.mxu2 %v2404_v53  ;;  %1000 = vmatpush.bf16.msrb.mxu0 %v2436_v54 }
  0x31   :  { %1259 = vmatpush.bf16.msrb.mxu2 %v2403_v57  ;;  %1001 = vmatpush.bf16.msrb.mxu0 %v2435_v59 }
  0x32   :  { %103 = vperm.xlu1 %2465, %v42_v55   ;;  %100 = vperm.xlu0 %2464, %v41_v56   ;;  %v2418_v55 = vld [vmem:[%s3496_s2 + $0xe0] sm:$0xff]  ;;  %v2395_v56 = vld [vmem:[%s3496_s2 + $0x28] sm:$0xff] }
  0x33   :  { %904 = vmatpush.bf16.msra.mxu3 %v2418_v55  ;;  %1210 = vmatpush.bf16.msrb.mxu1 %v2395_v56 }
  0x35   :  { %1260 = vmatpush.bf16.msrb.mxu2 %v2402_v62  ;;  %1002 = vmatpush.bf16.msrb.mxu0 %v2434_v0 }
  0x37   :  { %905 = vmatpush.bf16.msra.mxu3 %v2417_v60  ;;  %1211 = vmatpush.bf16.msrb.mxu1 %v2394_v61 }
  0x39   :  { %1261 = vmatpush.bf16.msrb.mxu2 %v2401_v3  ;;  %1003 = vmatpush.bf16.msrb.mxu0 %v2433_v4 }
  0x3b   :  { %906 = vmatpush.bf16.msra.mxu3 %v2416_v1  ;;  %1212 = vmatpush.bf16.msrb.mxu1 %v2393_v2 }
  0x3d   :  { %1262 = vmatpush.bf16.msrb.mxu2 %v2400_v7  ;;  %1004 = vmatpush.bf16.msrb.mxu0 %v2432_v8 }
  0x3f   :  { %907 = vmatpush.bf16.msra.mxu3 %v2415_v5  ;;  %1213 = vmatpush.bf16.msrb.mxu1 %v2392_v6 }
  0x41   :  { %1263 = vmatpush.bf16.msrb.mxu2 %v2399_v11  ;;  %1005 = vmatpush.bf16.msrb.mxu0 %v2431_v13 }
  0x43   :  { %908 = vmatpush.bf16.msra.mxu3 %v2414_v9  ;;  %1214 = vmatpush.bf16.msrb.mxu1 %v2391_v10 }
  0x45   :  { %1264 = vmatpush.bf16.msrb.mxu2 %v2398_v16  ;;  %1006 = vmatpush.bf16.msrb.mxu0 %v2430_v19 }
  0x47   :  { %1215 = vmatpush.bf16.msrb.mxu1 %v2390_v15  ;;  %950 = vmatpush.bf16.msrb.mxu3 %v2429_v20 }
  0x5e   :  { %v59_v36 = vpop.permute.xlu2 %58 }
  0x5f   :  { %vm109_vm6 = vcmp.eq.s32.totalorder %v59_v36, %v2710_v31 }
  0x66   :  { %v62_v37 = vpop.permute.xlu2 %61 }
  0x67   :  { %vm110_vm7 = vcmp.eq.s32.totalorder %v62_v37, %v2710_v31 }
  0x68   :  { %vm1926_vm8 = vmpackc.low %vm110_vm7, %vm109_vm6 }
  0x6e   :  { %v71_v41 = vpop.permute.xlu2 %70 }
  0x6f   :  { %vm113_vm12 = vcmp.eq.s32.totalorder %v71_v41, %v2710_v31 }
  0x74   :  { %v47_v29 = vpop.permute.xlu0 %46  ;;  %v53_v34 = vpop.permute.xlu1 %52 }
  0x75   :  { %vm105_vm1 = vcmp.eq.s32.totalorder %v47_v29, %v2710_v31  ;;  %vm107_vm3 = vcmp.eq.s32.totalorder %v53_v34, %v2710_v31 }
  0x76   :  { %v80_v43 = vpop.permute.xlu2 %79 }
  0x77   :  { %vm116_vm15 = vcmp.eq.s32.totalorder %v80_v43, %v2710_v31 }
  0x7c   :  { %v50_v32 = vpop.permute.xlu0 %49  ;;  %v56_v35 = vpop.permute.xlu1 %55 }
  0x7d   :  { %vm106_vm0 = vcmp.eq.s32.totalorder %v50_v32, %v2710_v31  ;;  %vm108_vm4 = vcmp.eq.s32.totalorder %v56_v35, %v2710_v31  ;;  %v2428_v35 = vld [vmem:[%s3496_s2 + $0x130] sm:$0xff] }
  0x7e   :  { %vm1922_vm2 = vmpackc.low %vm106_vm0, %vm105_vm1  ;;  %v89_v63 = vpop.permute.xlu2 %88  ;;  %951 = vmatpush.bf16.msrb.mxu3 %v2428_v35 }
  0x7f   :  { %1923 = vmatmul.msk.bf16.vlgmr.msra.gmra.mxu0 %vm1922_vm2, %v2470_v33  ;;  %1943 = vmatmul.msk.bf16.vlgmr.msra.gmra.mxu1 %vm1922_vm2, %v2470_v33  ;;  %vm1924_vm5 = vmpackc.low %vm108_vm4, %vm107_vm3  ;;  %vm119_vm6 = vcmp.eq.s32.totalorder %v89_v63, %v2710_v31 }
  0x80   :  { %1963 = vmatmul.msk.bf16.vlgmr.msra.gmra.mxu2 %vm1922_vm2, %v2470_v33 }
  0x84   :  { %v68_v38 = vpop.permute.xlu1 %67  ;;  %v65_v39 = vpop.permute.xlu0 %64 }
  0x85   :  { %vm112_vm9 = vcmp.eq.s32.totalorder %v68_v38, %v2710_v31  ;;  %vm111_vm10 = vcmp.eq.s32.totalorder %v65_v39, %v2710_v31 }
  0x86   :  { %vm1928_vm11 = vmpackc.low %vm112_vm9, %vm111_vm10  ;;  %v98_v14 = vpop.permute.xlu2 %97 }
  0x87   :  { %vm122_vm9 = vcmp.eq.s32.totalorder %v98_v14, %v2710_v31  ;;  %v2426_v14 = vld [vmem:[%s3496_s2 + $0x120] sm:$0xff] }
  0x8c   :  { %v74_v40 = vpop.permute.xlu0 %73  ;;  %v77_v42 = vpop.permute.xlu1 %76 }
  0x8d   :  { %vm114_vm13 = vcmp.eq.s32.totalorder %v74_v40, %v2710_v31  ;;  %vm115_vm0 = vcmp.eq.s32.totalorder %v77_v42, %v2710_v31 }
  0x8e   :  { %vm1930_vm14 = vmpackc.low %vm114_vm13, %vm113_vm12 }
  0x8f   :  { %1925 = vmatmul.msk.bf16.gmra.mxu0 %vm1924_vm5, %v2470_v33  ;;  %1945 = vmatmul.msk.bf16.gmra.mxu1 %vm1924_vm5, %v2470_v33  ;;  %vm1932_vm1 = vmpackc.low %vm116_vm15, %vm115_vm0 }
  0x90   :  { %1965 = vmatmul.msk.bf16.gmra.mxu2 %vm1924_vm5, %v2470_v33 }
  0x94   :  { %v86_v45 = vpop.permute.xlu1 %85  ;;  %v83_v46 = vpop.permute.xlu0 %82 }
  0x95   :  { %vm118_vm2 = vcmp.eq.s32.totalorder %v86_v45, %v2710_v31  ;;  %vm117_vm3 = vcmp.eq.s32.totalorder %v83_v46, %v2710_v31 }
  0x96   :  { %vm1934_vm4 = vmpackc.low %vm118_vm2, %vm117_vm3 }
  0x9c   :  { %v92_v58 = vpop.permute.xlu0 %91  ;;  %v95_v12 = vpop.permute.xlu1 %94 }
  0x9d   :  { %vm120_vm5 = vcmp.eq.s32.totalorder %v92_v58, %v2710_v31  ;;  %v2427_v58 = vld [vmem:[%s3496_s2 + $0x128] sm:$0xff] }
  0x9e   :  { %vm1936_vm7 = vmpackc.low %vm120_vm5, %vm119_vm6  ;;  %952 = vmatpush.bf16.msrb.mxu3 %v2427_v58 }
  0x9f   :  { %1927 = vmatmul.msk.bf16.gmra.mxu0 %vm1926_vm8, %v2470_v33  ;;  %1947 = vmatmul.msk.bf16.gmra.mxu1 %vm1926_vm8, %v2470_v33 }
  0xa0   :  { %1967 = vmatmul.msk.bf16.gmra.mxu2 %vm1926_vm8, %v2470_v33  ;;  %vm121_vm8 = vcmp.eq.s32.totalorder %v95_v12, %v2710_v31 }
  0xa1   :  { %vm1938_vm10 = vmpackc.low %vm122_vm9, %vm121_vm8 }
  0xa2   :  { %953 = vmatpush.bf16.msrb.mxu3 %v2426_v14 }
  0xa4   :  { %v104_v24 = vpop.permute.xlu1 %103  ;;  %v101_v25 = vpop.permute.xlu0 %100 }
  0xa5   :  { %vm123_vm12 = vcmp.eq.s32.totalorder %v101_v25, %v2710_v31 }
  0xaf   :  { %1929 = vmatmul.msk.bf16.gmra.mxu0 %vm1928_vm11, %v2470_v33  ;;  %1949 = vmatmul.msk.bf16.gmra.mxu1 %vm1928_vm11, %v2470_v33 }
  0xb0   :  { %1969 = vmatmul.msk.bf16.gmra.mxu2 %vm1928_vm11, %v2470_v33  ;;  %vm124_vm11 = vcmp.eq.s32.totalorder %v104_v24, %v2710_v31 }
  0xb1   :  { %vm1940_vm13 = vmpackc.low %vm124_vm11, %vm123_vm12 }
  0xbf   :  { %1931 = vmatmul.msk.bf16.gmra.mxu0 %vm1930_vm14, %v2470_v33  ;;  %1951 = vmatmul.msk.bf16.gmra.mxu1 %vm1930_vm14, %v2470_v33 }
  0xc0   :  { %1971 = vmatmul.msk.bf16.gmra.mxu2 %vm1930_vm14, %v2470_v33 }
  0xcf   :  { %1933 = vmatmul.msk.bf16.gmra.mxu0 %vm1932_vm1, %v2470_v33  ;;  %1953 = vmatmul.msk.bf16.gmra.mxu1 %vm1932_vm1, %v2470_v33 }
  0xd0   :  { %1973 = vmatmul.msk.bf16.gmra.mxu2 %vm1932_vm1, %v2470_v33 }
  0xdf   :  { %1935 = vmatmul.msk.bf16.gmra.mxu0 %vm1934_vm4, %v2470_v33  ;;  %1955 = vmatmul.msk.bf16.gmra.mxu1 %vm1934_vm4, %v2470_v33 }
  0xe0   :  { %1975 = vmatmul.msk.bf16.gmra.mxu2 %vm1934_vm4, %v2470_v33 }
  0xef   :  { %1937 = vmatmul.msk.bf16.gmra.mxu0 %vm1936_vm7, %v2470_v33  ;;  %1957 = vmatmul.msk.bf16.gmra.mxu1 %vm1936_vm7, %v2470_v33 }
  0xf0   :  { %1977 = vmatmul.msk.bf16.gmra.mxu2 %vm1936_vm7, %v2470_v33 }
  0xfc   :  { %v324_v17 = vpop.f32.mrf.mxu0  ;;  %v383_v18 = vpop.f32.mrf.mxu1 }
  0xfd   :  { %v492_v42 = vpack.c.bf16 %v383_v18, %v324_v17 }
  0xff   :  { %1939 = vmatmul.msk.bf16.gmra.mxu0 %vm1938_vm10, %v2470_v33  ;;  %1959 = vmatmul.msk.bf16.gmra.mxu1 %vm1938_vm10, %v2470_v33  ;;  %v1052_v49 = vunpack.c.l.b16 %v492_v42  ;;  %v1053_v51 = vunpack.c.h.b16 %v492_v42 }
 0x100   :  { %1979 = vmatmul.msk.bf16.gmra.mxu2 %vm1938_vm10, %v2470_v33 }
 0x103   :  { %v442_v21 = vpop.f32.mrf.mxu2 }
 0x104   :  { %v326_v22 = vpop.f32.mrf.mxu0  ;;  %v385_v23 = vpop.f32.mrf.mxu1  ;;  %v493_v26 = vpack.c.bf16 %v442_v21, %v442_v21 }
 0x105   :  { %v494_v40 = vpack.c.bf16 %v385_v23, %v326_v22 }
 0x106   :  { %v2858_v32 = vunpack.c.l.b16 %v493_v26 }
 0x107   :  { %v1055_v45 = vunpack.c.l.b16 %v494_v40  ;;  %v1056_v47 = vunpack.c.h.b16 %v494_v40 }
 0x109   :  { %v1058_v54 = vpack.c.b16 %v1055_v45, %v1052_v49  ;;  %v1059_v57 = vpack.c.b16 %v1056_v47, %v1053_v51 }
 0x10b   :  { %v444_v27 = vpop.f32.mrf.mxu2 }
 0x10c   :  { %v495_v28 = vpack.c.bf16 %v444_v27, %v444_v27  ;;  %v329_v29 = vpop.f32.mrf.mxu0  ;;  %v388_v30 = vpop.f32.mrf.mxu1 }
 0x10d   :  { %v496_v36 = vpack.c.bf16 %v388_v30, %v329_v29 }
 0x10e   :  { %v2860_v34 = vunpack.c.l.b16 %v495_v28 }
 0x10f   :  { %1941 = vmatmul.msk.bf16.gmra.mxu0 %vm1940_vm13, %v2470_v33  ;;  %1961 = vmatmul.msk.bf16.gmra.mxu1 %vm1940_vm13, %v2470_v33  ;;  %v661_v43 = vunpack.c.l.b16 %v496_v36  ;;  %v662_v7 = vunpack.c.h.b16 %v496_v36 }
 0x110   :  { %1981 = vmatmul.msk.bf16.gmra.mxu2 %vm1940_vm13, %v2470_v33 }
 0x113   :  { %v447_v37 = vpop.f32.mrf.mxu2 }
 0x114   :  { %v331_v38 = vpop.f32.mrf.mxu0  ;;  %v390_v39 = vpop.f32.mrf.mxu1  ;;  %v497_v48 = vpack.c.bf16 %v447_v37, %v447_v37 }
 0x115   :  { %v498_v41 = vpack.c.bf16 %v390_v39, %v331_v38  ;;  %v2425_v38 = vld [vmem:[%s3496_s2 + $0x118] sm:$0xff] }
 0x116   :  { %v663_v55 = vunpack.c.l.b16 %v497_v48  ;;  %954 = vmatpush.bf16.msrb.mxu3 %v2425_v38  ;;  %v2451_v38 = vld [vmem:[%s3496_s2 + $0x1e8] sm:$0xff] }
 0x117   :  { %v664_v44 = vunpack.c.l.b16 %v498_v41  ;;  %v665_v5 = vunpack.c.h.b16 %v498_v41 }
 0x119   :  { %v709_v46 = vpack.c.b16 %v664_v44, %v661_v43  ;;  %v2879_v13 = vpack.c.b16 %v665_v5, %v662_v7 }
 0x11b   :  { %v449_v50 = vpop.f32.mrf.mxu2  ;;  %909 = vmatmul.bf16.vlgmr.msra.gmra.mxu3 %v709_v46 }
 0x11c   :  { %v499_v52 = vpack.c.bf16 %v449_v50, %v449_v50  ;;  %v334_v33 = vpop.f32.mrf.mxu0  ;;  %v393_v53 = vpop.f32.mrf.mxu1 }
 0x11d   :  { %v500_v60 = vpack.c.bf16 %v393_v53, %v334_v33 }
 0x11e   :  { %v666_v56 = vunpack.c.l.b16 %v499_v52 }
 0x11f   :  { %1216 = vmatmul.bf16.vlgmr.msrb.gmra.mxu1 %v1058_v54  ;;  %v667_v1 = vunpack.c.l.b16 %v500_v60  ;;  %v668_v27 = vunpack.c.h.b16 %v500_v60 }
 0x120   :  { %1265 = vmatmul.bf16.vlgmr.msrb.gmra.mxu2 %v1059_v57  ;;  %v2873_v59 = vpack.c.b16 %v666_v56, %v663_v55  ;;  %v2424_v57 = vld [vmem:[%s3496_s2 + $0x110] sm:$0xff] }
 0x121   :  { %955 = vmatpush.bf16.msrb.mxu3 %v2424_v57  ;;  %v2422_v57 = vld [vmem:[%s3496_s2 + $0x100] sm:$0xff] }
 0x122   :  { %1007 = vmatmul.bf16.vlgmr.msrb.gmra.mxu0 %v2873_v59 }
 0x123   :  { %v452_v61 = vpop.f32.mrf.mxu2 }
 0x124   :  { %v336_v62 = vpop.f32.mrf.mxu0  ;;  %v395_v63 = vpop.f32.mrf.mxu1  ;;  %v501_v4 = vpack.c.bf16 %v452_v61, %v452_v61 }
 0x125   :  { %v502_v0 = vpack.c.bf16 %v395_v63, %v336_v62 }
 0x126   :  { %v669_v11 = vunpack.c.l.b16 %v501_v4 }
 0x127   :  { %v670_v2 = vunpack.c.l.b16 %v502_v0  ;;  %v671_v24 = vunpack.c.h.b16 %v502_v0 }
 0x129   :  { %v2876_v3 = vpack.c.b16 %v670_v2, %v667_v1  ;;  %v2891_v37 = vpack.c.b16 %v671_v24, %v668_v27 }
 0x12b   :  { %v454_v6 = vpop.f32.mrf.mxu2  ;;  %914 = vmatmul.bf16.gmra.mxu3 %v2876_v3 }
 0x12c   :  { %v503_v8 = vpack.c.bf16 %v454_v6, %v454_v6  ;;  %v339_v9 = vpop.f32.mrf.mxu0  ;;  %v398_v10 = vpop.f32.mrf.mxu1 }
 0x12d   :  { %v504_v16 = vpack.c.bf16 %v398_v10, %v339_v9 }
 0x12e   :  { %v672_v12 = vunpack.c.l.b16 %v503_v8 }
 0x12f   :  { %1221 = vmatmul.bf16.gmra.mxu1 %v709_v46  ;;  %v673_v21 = vunpack.c.l.b16 %v504_v16  ;;  %v674_v51 = vunpack.c.h.b16 %v504_v16 }
 0x130   :  { %1270 = vmatmul.bf16.gmra.mxu2 %v2879_v13  ;;  %v2885_v15 = vpack.c.b16 %v672_v12, %v669_v11 }
 0x132   :  { %1012 = vmatmul.bf16.gmra.mxu0 %v2885_v15 }
 0x133   :  { %v457_v17 = vpop.f32.mrf.mxu2 }
 0x134   :  { %v341_v18 = vpop.f32.mrf.mxu0  ;;  %v400_v19 = vpop.f32.mrf.mxu1  ;;  %v505_v25 = vpack.c.bf16 %v457_v17, %v457_v17  ;;  %v2423_v17 = vld [vmem:[%s3496_s2 + $0x108] sm:$0xff] }
 0x135   :  { %v506_v20 = vpack.c.bf16 %v400_v19, %v341_v18  ;;  %v2453_v18 = vld [vmem:[%s3496_s2 + $0x1f8] sm:$0xff]  ;;  %956 = vmatpush.bf16.msrb.mxu3 %v2423_v17 }
 0x136   :  { %v675_v35 = vunpack.c.l.b16 %v505_v25  ;;  %v2461_v19 = vld [vmem:[%s3496_s2 + $0x238] sm:$0xff]  ;;  %1613 = vmatpush.bf16.msra.mxu1 %v2453_v18  ;;  %v2452_v25 = vld [vmem:[%s3496_s2 + $0x1f0] sm:$0xff]  ;;  %v2439_v18 = vld [vmem:[%s3496_s2 + $0x188] sm:$0xff] }
 0x137   :  { %v676_v22 = vunpack.c.l.b16 %v506_v20  ;;  %v677_v48 = vunpack.c.h.b16 %v506_v20  ;;  %1662 = vmatpush.bf16.msra.mxu2 %v2461_v19 }
 0x139   :  { %v2888_v23 = vpack.c.b16 %v676_v22, %v673_v21  ;;  %v2904_v56 = vpack.c.b16 %v677_v48, %v674_v51  ;;  %v2445_v21 = vld [vmem:[%s3496_s2 + $0x1b8] sm:$0xff]  ;;  %v2458_v48 = vld [vmem:[%s3496_s2 + $0x220] sm:$0xff]  ;;  %957 = vmatpush.bf16.msrb.mxu3 %v2422_v57 }
 0x13a   :  { %1564 = vmatpush.bf16.msra.mxu0 %v2445_v21  ;;  %1614 = vmatpush.bf16.msra.mxu1 %v2452_v25  ;;  %v2446_v25 = vld [vmem:[%s3496_s2 + $0x1c0] sm:$0xff] }
 0x13b   :  { %v459_v26 = vpop.f32.mrf.mxu2  ;;  %919 = vmatmul.bf16.gmra.mxu3 %v2888_v23 }
 0x13c   :  { %v507_v28 = vpack.c.bf16 %v459_v26, %v459_v26  ;;  %v344_v29 = vpop.f32.mrf.mxu0  ;;  %v403_v30 = vpop.f32.mrf.mxu1  ;;  %v2460_v26 = vld [vmem:[%s3496_s2 + $0x230] sm:$0xff] }
 0x13d   :  { %v508_v40 = vpack.c.bf16 %v403_v30, %v344_v29  ;;  %1663 = vmatpush.bf16.msra.mxu2 %v2460_v26  ;;  %v2444_v30 = vld [vmem:[%s3496_s2 + $0x1b0] sm:$0xff]  ;;  %v2454_v26 = vld [vmem:[%s3496_s2 + $0x200] sm:$0xff] }
 0x13e   :  { %v678_v36 = vunpack.c.l.b16 %v507_v28  ;;  %1565 = vmatpush.bf16.msra.mxu0 %v2444_v30  ;;  %1615 = vmatpush.bf16.msra.mxu1 %v2451_v38 }
 0x13f   :  { %1226 = vmatmul.bf16.gmra.mxu1 %v2876_v3  ;;  %v679_v45 = vunpack.c.l.b16 %v508_v40  ;;  %v680_v8 = vunpack.c.h.b16 %v508_v40  ;;  %v2459_v40 = vld [vmem:[%s3496_s2 + $0x228] sm:$0xff] }
 0x140   :  { %1275 = vmatmul.bf16.gmra.mxu2 %v2891_v37  ;;  %v2898_v39 = vpack.c.b16 %v678_v36, %v675_v35 }
 0x141   :  { %1664 = vmatpush.bf16.msra.mxu2 %v2459_v40 }
 0x142   :  { %1017 = vmatmul.bf16.gmra.mxu0 %v2898_v39 }
 0x143   :  { %v462_v41 = vpop.f32.mrf.mxu2 }
 0x144   :  { %v346_v42 = vpop.f32.mrf.mxu0  ;;  %v405_v43 = vpop.f32.mrf.mxu1  ;;  %v509_v49 = vpack.c.bf16 %v462_v41, %v462_v41 }
 0x145   :  { %v510_v44 = vpack.c.bf16 %v405_v43, %v346_v42  ;;  %v2443_v42 = vld [vmem:[%s3496_s2 + $0x1a8] sm:$0xff]  ;;  %1665 = vmatpush.bf16.msra.mxu2 %v2458_v48 }
 0x146   :  { %v681_v54 = vunpack.c.l.b16 %v509_v49  ;;  %1566 = vmatpush.bf16.msra.mxu0 %v2443_v42  ;;  %v2413_v42 = vld [vmem:[%s3496_s2 + $0xb8] sm:$0xff] }
 0x147   :  { %v682_v46 = vunpack.c.l.b16 %v510_v44  ;;  %v683_v5 = vunpack.c.h.b16 %v510_v44  ;;  %1306 = vmatpush.bf16.msra.mxu3 %v2413_v42 }
 0x149   :  { %v2901_v47 = vpack.c.b16 %v682_v46, %v679_v45  ;;  %v2923_v16 = vpack.c.b16 %v683_v5, %v680_v8  ;;  %v2450_v46 = vld [vmem:[%s3496_s2 + $0x1e0] sm:$0xff]  ;;  %v2456_v5 = vld [vmem:[%s3496_s2 + $0x210] sm:$0xff] }
 0x14a   :  { %1616 = vmatpush.bf16.msra.mxu1 %v2450_v46 }
 0x14b   :  { %v464_v50 = vpop.f32.mrf.mxu2  ;;  %924 = vmatmul.bf16.gmra.mxu3 %v2901_v47 }
 0x14c   :  { %v511_v52 = vpack.c.bf16 %v464_v50, %v464_v50  ;;  %v349_v33 = vpop.f32.mrf.mxu0  ;;  %v408_v53 = vpop.f32.mrf.mxu1 }
 0x14d   :  { %v2914_v60 = vpack.c.bf16 %v408_v53, %v349_v33  ;;  %v2442_v33 = vld [vmem:[%s3496_s2 + $0x1a0] sm:$0xff] }
 0x14e   :  { %v684_v55 = vunpack.c.l.b16 %v511_v52  ;;  %1567 = vmatpush.bf16.msra.mxu0 %v2442_v33 }
 0x14f   :  { %1231 = vmatmul.bf16.gmra.mxu1 %v2888_v23  ;;  %v685_v1 = vunpack.c.l.b16 %v2914_v60  ;;  %v686_v49 = vunpack.c.h.b16 %v2914_v60  ;;  %v2449_v60 = vld [vmem:[%s3496_s2 + $0x1d8] sm:$0xff] }
 0x150   :  { %1280 = vmatmul.bf16.gmra.mxu2 %v2904_v56  ;;  %v2911_v58 = vpack.c.b16 %v684_v55, %v681_v54  ;;  %1617 = vmatpush.bf16.msra.mxu1 %v2449_v60 }
 0x152   :  { %1022 = vmatmul.bf16.gmra.mxu0 %v2911_v58 }
 0x153   :  { %v467_v61 = vpop.f32.mrf.mxu2 }
 0x154   :  { %v351_v62 = vpop.f32.mrf.mxu0  ;;  %v410_v63 = vpop.f32.mrf.mxu1  ;;  %v513_v6 = vpack.c.bf16 %v467_v61, %v467_v61  ;;  %v2457_v61 = vld [vmem:[%s3496_s2 + $0x218] sm:$0xff] }
 0x155   :  { %v2916_v0 = vpack.c.bf16 %v410_v63, %v351_v62  ;;  %1666 = vmatpush.bf16.msra.mxu2 %v2457_v61  ;;  %v2441_v63 = vld [vmem:[%s3496_s2 + $0x198] sm:$0xff]  ;;  %v2412_v61 = vld [vmem:[%s3496_s2 + $0xb0] sm:$0xff] }
 0x156   :  { %v687_v12 = vunpack.c.l.b16 %v513_v6  ;;  %1568 = vmatpush.bf16.msra.mxu0 %v2441_v63  ;;  %1307 = vmatpush.bf16.msra.mxu3 %v2412_v61 }
 0x157   :  { %v688_v2 = vunpack.c.l.b16 %v2916_v0  ;;  %v689_v43 = vunpack.c.h.b16 %v2916_v0 }
 0x159   :  { %v2920_v4 = vpack.c.b16 %v688_v2, %v685_v1  ;;  %v2980_v55 = vpack.c.b16 %v689_v43, %v686_v49  ;;  %v2448_v2 = vld [vmem:[%s3496_s2 + $0x1d0] sm:$0xff]  ;;  %1667 = vmatpush.bf16.msra.mxu2 %v2456_v5 }
 0x15a   :  { %1618 = vmatpush.bf16.msra.mxu1 %v2448_v2 }
 0x15b   :  { %v469_v7 = vpop.f32.mrf.mxu2  ;;  %929 = vmatmul.bf16.gmra.mxu3 %v2920_v4 }
 0x15c   :  { %v515_v9 = vpack.c.bf16 %v469_v7, %v469_v7  ;;  %v354_v10 = vpop.f32.mrf.mxu0  ;;  %v413_v11 = vpop.f32.mrf.mxu1 }
 0x15d   :  { %v2942_v22 = vpack.c.bf16 %v413_v11, %v354_v10 }
 0x15e   :  { %v690_v14 = vunpack.c.l.b16 %v515_v9  ;;  %v2440_v9 = vld [vmem:[%s3496_s2 + $0x190] sm:$0xff] }
 0x15f   :  { %1236 = vmatmul.bf16.gmra.mxu1 %v2901_v47  ;;  %v691_v35 = vunpack.c.l.b16 %v2942_v22  ;;  %1569 = vmatpush.bf16.msra.mxu0 %v2440_v9 }
 0x160   :  { %1285 = vmatmul.bf16.gmra.mxu2 %v2923_v16  ;;  %v2936_v20 = vpack.c.b16 %v690_v14, %v687_v12  ;;  %v2447_v12 = vld [vmem:[%s3496_s2 + $0x1c8] sm:$0xff] }
 0x161   :  { %v2455_v14 = vld [vmem:[%s3496_s2 + $0x208] sm:$0xff]  ;;  %1619 = vmatpush.bf16.msra.mxu1 %v2447_v12 }
 0x162   :  { %1027 = vmatmul.bf16.gmra.mxu0 %v2936_v20  ;;  %1668 = vmatpush.bf16.msra.mxu2 %v2455_v14  ;;  %v2411_v14 = vld [vmem:[%s3496_s2 + $0xa8] sm:$0xff] }
 0x163   :  { %v472_v24 = vpop.f32.mrf.mxu2  ;;  %1570 = vmatpush.bf16.msra.mxu0 %v2439_v18  ;;  %1308 = vmatpush.bf16.msra.mxu3 %v2411_v14 }
 0x164   :  { %v356_v27 = vpop.f32.mrf.mxu0  ;;  %v415_v28 = vpop.f32.mrf.mxu1  ;;  %v517_v44 = vpack.c.bf16 %v472_v24, %v472_v24 }
 0x165   :  { %v2950_v29 = vpack.c.bf16 %v415_v28, %v356_v27  ;;  %v692_v27 = vunpack.c.h.b16 %v2942_v22  ;;  %1620 = vmatpush.bf16.msra.mxu1 %v2446_v25 }
 0x166   :  { %v693_v53 = vunpack.c.l.b16 %v517_v44  ;;  %1669 = vmatpush.bf16.msra.mxu2 %v2454_v26 }
 0x167   :  { %v694_v36 = vunpack.c.l.b16 %v2950_v29  ;;  %v695_v19 = vunpack.c.h.b16 %v2950_v29  ;;  %v2438_v29 = vld [vmem:[%s3496_s2 + $0x180] sm:$0xff] }
 0x168   :  { %1571 = vmatpush.bf16.msra.mxu0 %v2438_v29 }
 0x169   :  { %v2963_v41 = vpack.c.b16 %v694_v36, %v691_v35  ;;  %v3034_v40 = vpack.c.b16 %v695_v19, %v692_v27 }
 0x16b   :  { %v474_v45 = vpop.f32.mrf.mxu2  ;;  %934 = vmatmul.bf16.gmra.mxu3 %v2963_v41 }
 0x16c   :  { %v519_v50 = vpack.c.bf16 %v474_v45, %v474_v45  ;;  %v359_v51 = vpop.f32.mrf.mxu0  ;;  %v418_v52 = vpop.f32.mrf.mxu1 }
 0x16d   :  { %v2999_v0 = vpack.c.bf16 %v418_v52, %v359_v51 }
 0x16e   :  { %v696_v54 = vunpack.c.l.b16 %v519_v50 }
 0x16f   :  { %1241 = vmatmul.bf16.gmra.mxu1 %v2920_v4  ;;  %v697_v10 = vunpack.c.l.b16 %v2999_v0  ;;  %v698_v63 = vunpack.c.h.b16 %v2999_v0 }
 0x170   :  { %1290 = vmatmul.bf16.gmra.mxu2 %v2980_v55  ;;  %v2993_v62 = vpack.c.b16 %v696_v54, %v693_v53 }
 0x172   :  { %1032 = vmatmul.bf16.gmra.mxu0 %v2993_v62 }
 0x173   :  { %v477_v1 = vpop.f32.mrf.mxu2 }
 0x174   :  { %v361_v6 = vpop.f32.mrf.mxu0  ;;  %v420_v7 = vpop.f32.mrf.mxu1  ;;  %v521_v21 = vpack.c.bf16 %v477_v1, %v477_v1 }
 0x175   :  { %v522_v8 = vpack.c.bf16 %v420_v7, %v361_v6 }
 0x176   :  { %v699_v36 = vunpack.c.l.b16 %v521_v21 }
 0x177   :  { %v700_v11 = vunpack.c.l.b16 %v522_v8  ;;  %v701_v54 = vunpack.c.h.b16 %v522_v8 }
 0x179   :  { %v3017_v17 = vpack.c.b16 %v700_v11, %v697_v10  ;;  %v3057_v9 = vpack.c.b16 %v701_v54, %v698_v63 }
 0x17b   :  { %v479_v24 = vpop.f32.mrf.mxu2  ;;  %939 = vmatmul.bf16.gmra.mxu3 %v3017_v17 }
 0x17c   :  { %v523_v28 = vpack.c.bf16 %v479_v24, %v479_v24  ;;  %v364_v30 = vpop.f32.mrf.mxu0  ;;  %v423_v35 = vpop.f32.mrf.mxu1 }
 0x17d   :  { %v524_v43 = vpack.c.bf16 %v423_v35, %v364_v30 }
 0x17e   :  { %v702_v38 = vunpack.c.l.b16 %v523_v28  ;;  %v2410_v28 = vld [vmem:[%s3496_s2 + $0xa0] sm:$0xff] }
 0x17f   :  { %1246 = vmatmul.bf16.gmra.mxu1 %v2963_v41  ;;  %v703_v49 = vunpack.c.l.b16 %v524_v43  ;;  %v704_v50 = vunpack.c.h.b16 %v524_v43  ;;  %1309 = vmatpush.bf16.msra.mxu3 %v2410_v28  ;;  %v2409_v43 = vld [vmem:[%s3496_s2 + $0x98] sm:$0xff] }
 0x180   :  { %1295 = vmatmul.bf16.gmra.mxu2 %v3034_v40  ;;  %v3041_v22 = vpack.c.b16 %v702_v38, %v699_v36 }
 0x182   :  { %1037 = vmatmul.bf16.gmra.mxu0 %v3041_v22 }
 0x183   :  { %v482_v44 = vpop.f32.mrf.mxu2  ;;  %1310 = vmatpush.bf16.msra.mxu3 %v2409_v43 }
 0x184   :  { %v366_v45 = vpop.f32.mrf.mxu0  ;;  %v425_v46 = vpop.f32.mrf.mxu1  ;;  %v525_v57 = vpack.c.bf16 %v482_v44, %v482_v44 }
 0x185   :  { %v526_v48 = vpack.c.bf16 %v425_v46, %v366_v45 }
 0x186   :  { %v705_v6 = vunpack.c.l.b16 %v525_v57 }
 0x187   :  { %v707_v51 = vunpack.c.h.b16 %v526_v48  ;;  %v706_v52 = vunpack.c.l.b16 %v526_v48 }
 0x189   :  { %v3044_v33 = vpack.c.b16 %v706_v52, %v703_v49  ;;  %v3046_v53 = vpack.c.b16 %v707_v51, %v704_v50  ;;  %v2408_v51 = vld [vmem:[%s3496_s2 + $0x90] sm:$0xff] }
 0x18a   :  { %1311 = vmatpush.bf16.msra.mxu3 %v2408_v51 }
 0x18b   :  { %v484_v60 = vpop.f32.mrf.mxu2  ;;  %944 = vmatmul.bf16.gmra.mxu3 %v3044_v33 }
 0x18c   :  { %v527_v1 = vpack.c.bf16 %v484_v60, %v484_v60  ;;  %v3053_v2 = vpop.f32.mrf.mxu1  ;;  %v3055_v5 = vpop.f32.mrf.mxu0 }
 0x18e   :  { %v708_v7 = vunpack.c.l.b16 %v527_v1  ;;  %v2407_v1 = vld [vmem:[%s3496_s2 + $0x88] sm:$0xff] }
 0x18f   :  { %1251 = vmatmul.bf16.gmra.mxu1 %v3017_v17  ;;  %1312 = vmatpush.bf16.msra.mxu3 %v2407_v1  ;;  %v2406_v1 = vld [vmem:[%s3496_s2 + $0x80] sm:$0xff] }
 0x190   :  { %1300 = vmatmul.bf16.gmra.mxu2 %v3057_v9  ;;  %v3061_v8 = vpack.c.b16 %v708_v7, %v705_v6 }
 0x192   :  { %1042 = vmatmul.bf16.gmra.mxu0 %v3061_v8 }
 0x193   :  { %v3064_v10 = vpop.f32.mrf.mxu2  ;;  %1313 = vmatpush.bf16.msra.mxu3 %v2406_v1 }
 0x194   :  { %v3066_v0 = vpop.f32.mrf.mxu1  ;;  %v3068_v11 = vpop.f32.mrf.mxu0 }
 0x19b   :  { %v3070_v12 = vpop.f32.mrf.mxu2  ;;  %958 = vmatmul.bf16.vlgmr.msrb.gmra.mxu3 %v2879_v13 }
 0x19c   :  { %v3076_v18 = vpop.f32.mrf.mxu1 }
 0x19e   :  { %v3078_v19 = vpop.f32.mrf.mxu3 }
 0x19f   :  { %v3080_v21 = vpop.f32.mrf.mxu0  ;;  %1621 = vmatmul.bf16.vlgmr.msra.gmra.mxu1 %v2891_v37 }
 0x1a0   :  { %1670 = vmatmul.bf16.vlgmr.msra.gmra.mxu2 %v2885_v15 }
 0x1a2   :  { %1572 = vmatmul.bf16.vlgmr.msra.gmra.mxu0 %v2876_v3 }
 0x1a3   :  { %v3085_v24 = vpop.f32.mrf.mxu2 }
 0x1a4   :  { %v3087_v13 = vpop.f32.mrf.mxu1 }
 0x1a6   :  { %v3089_v25 = vpop.f32.mrf.mxu3 }
 0x1a7   :  { %v3091_v26 = vpop.f32.mrf.mxu0 }
 0x1ab   :  { %v3093_v27 = vpop.f32.mrf.mxu2  ;;  %963 = vmatmul.bf16.gmra.mxu3 %v2891_v37 }
 0x1ac   :  { %v3099_v30 = vpop.f32.mrf.mxu1 }
 0x1ae   :  { %v3101_v3 = vpop.f32.mrf.mxu3 }
 0x1af   :  { %v3103_v35 = vpop.f32.mrf.mxu0  ;;  %1626 = vmatmul.bf16.gmra.mxu1 %v2904_v56 }
 0x1b0   :  { %1675 = vmatmul.bf16.gmra.mxu2 %v2898_v39 }
 0x1b2   :  { %1577 = vmatmul.bf16.gmra.mxu0 %v2888_v23 }
 0x1b3   :  { %v3108_v29 = vpop.f32.mrf.mxu2 }
 0x1b4   :  { %v3110_v37 = vpop.f32.mrf.mxu1 }
 0x1b6   :  { %v3112_v36 = vpop.f32.mrf.mxu3 }
 0x1b7   :  { %v3114_v38 = vpop.f32.mrf.mxu0 }
 0x1bb   :  { %v3116_v42 = vpop.f32.mrf.mxu2  ;;  %968 = vmatmul.bf16.gmra.mxu3 %v2904_v56 }
 0x1bc   :  { %v3122_v44 = vpop.f32.mrf.mxu1 }
 0x1be   :  { %v3124_v23 = vpop.f32.mrf.mxu3 }
 0x1bf   :  { %v3126_v45 = vpop.f32.mrf.mxu0  ;;  %1631 = vmatmul.bf16.gmra.mxu1 %v2923_v16 }
 0x1c0   :  { %1680 = vmatmul.bf16.gmra.mxu2 %v2911_v58 }
 0x1c2   :  { %1582 = vmatmul.bf16.gmra.mxu0 %v2901_v47 }
 0x1c3   :  { %v3131_v46 = vpop.f32.mrf.mxu2 }
 0x1c4   :  { %v3133_v56 = vpop.f32.mrf.mxu1 }
 0x1c6   :  { %v3135_v48 = vpop.f32.mrf.mxu3 }
 0x1c7   :  { %v3137_v49 = vpop.f32.mrf.mxu0 }
 0x1cb   :  { %v3139_v50 = vpop.f32.mrf.mxu2  ;;  %973 = vmatmul.bf16.gmra.mxu3 %v2923_v16 }
 0x1cc   :  { %v3145_v52 = vpop.f32.mrf.mxu1 }
 0x1ce   :  { %v3147_v47 = vpop.f32.mrf.mxu3 }
 0x1cf   :  { %v3149_v54 = vpop.f32.mrf.mxu0  ;;  %1636 = vmatmul.bf16.gmra.mxu1 %v2980_v55 }
 0x1d0   :  { %1685 = vmatmul.bf16.gmra.mxu2 %v2936_v20 }
 0x1d2   :  { %1587 = vmatmul.bf16.gmra.mxu0 %v2920_v4 }
 0x1d3   :  { %v3154_v57 = vpop.f32.mrf.mxu2 }
 0x1d4   :  { %v3156_v16 = vpop.f32.mrf.mxu1 }
 0x1d6   :  { %v3158_v60 = vpop.f32.mrf.mxu3 }
 0x1d7   :  { %v3160_v61 = vpop.f32.mrf.mxu0 }
 0x1db   :  { %v3162_v63 = vpop.f32.mrf.mxu2  ;;  %978 = vmatmul.bf16.gmra.mxu3 %v2980_v55 }
 0x1dc   :  { %v3168_v6 = vpop.f32.mrf.mxu1 }
 0x1dd   :  { %3501 = vst [vmem:[#allocation2_spill] sm:$0xff] %v3168_v6 }
 0x1de   :  { %v3170_v4 = vpop.f32.mrf.mxu3 }
 0x1df   :  { %v3172_v7 = vpop.f32.mrf.mxu0  ;;  %1641 = vmatmul.bf16.gmra.mxu1 %v3034_v40 }
 0x1e0   :  { %3502 = vst [vmem:[#allocation3_spill] sm:$0xff] %v3172_v7  ;;  %1690 = vmatmul.bf16.gmra.mxu2 %v2993_v62 }
 0x1e2   :  { %1592 = vmatmul.bf16.gmra.mxu0 %v2963_v41 }
 0x1e3   :  { %v3177_v14 = vpop.f32.mrf.mxu2 }
 0x1e4   :  { %3503 = vst [vmem:[#allocation4_spill] sm:$0xff] %v3177_v14  ;;  %v3179_v55 = vpop.f32.mrf.mxu1 }
 0x1e5   :  { %3504 = vst [vmem:[#allocation5_spill] sm:$0xff] %v3179_v55 }
 0x1e6   :  { %v3181_v28 = vpop.f32.mrf.mxu3 }
 0x1e7   :  { %3505 = vst [vmem:[#allocation6_spill] sm:$0xff] %v3181_v28  ;;  %v3183_v43 = vpop.f32.mrf.mxu0 }
 0x1e8   :  { %3506 = vst [vmem:[#allocation7_spill] sm:$0xff] %v3183_v43 }
 0x1eb   :  { %v3185_v51 = vpop.f32.mrf.mxu2  ;;  %983 = vmatmul.bf16.gmra.mxu3 %v3034_v40 }
 0x1ec   :  { %3507 = vst [vmem:[#allocation8_spill] sm:$0xff] %v3185_v51  ;;  %v3191_v31 = vpop.f32.mrf.mxu1 }
 0x1ed   :  { %3508 = vst [vmem:[#allocation9_spill] sm:$0xff] %v3191_v31 }
 0x1ee   :  { %v3193_v41 = vpop.f32.mrf.mxu3 }
 0x1ef   :  { %v3195_v14 = vpop.f32.mrf.mxu0  ;;  %1646 = vmatmul.bf16.gmra.mxu1 %v3057_v9 }
 0x1f0   :  { %1695 = vmatmul.bf16.gmra.mxu2 %v3041_v22 }
 0x1f2   :  { %1597 = vmatmul.bf16.gmra.mxu0 %v3017_v17 }
 0x1f3   :  { %v3200_v51 = vpop.f32.mrf.mxu2 }
 0x1f4   :  { %3509 = vst [vmem:[#allocation10_spill] sm:$0xff] %v3200_v51  ;;  %v3202_v40 = vpop.f32.mrf.mxu1 }
 0x1f5   :  { %3510 = vst [vmem:[#allocation11_spill] sm:$0xff] %v3202_v40 }
 0x1f6   :  { %v3204_v55 = vpop.f32.mrf.mxu3 }
 0x1f7   :  { %3511 = vst [vmem:[#allocation12_spill] sm:$0xff] %v3204_v55  ;;  %v3206_v43 = vpop.f32.mrf.mxu0 }
 0x1f8   :  { %3512 = vst [vmem:[#allocation13_spill] sm:$0xff] %v3206_v43 }
 0x1fb   :  { %v3208_v6 = vpop.f32.mrf.mxu2  ;;  %988 = vmatmul.bf16.gmra.mxu3 %v3057_v9  ;;  %v531_v9 = vpack.c.bf16 %v3070_v12, %v3070_v12 }
 0x1fc   :  { %3513 = vst [vmem:[#allocation14_spill] sm:$0xff] %v3208_v6  ;;  %v3211_v1 = vpop.f32.mrf.mxu1  ;;  %v530_v6 = vpack.c.bf16 %v3066_v0, %v3068_v11 }
 0x1fd   :  { %3514 = vst [vmem:[#allocation15_spill] sm:$0xff] %v3211_v1 }
 0x1fe   :  { %v3213_v28 = vpop.f32.mrf.mxu3  ;;  %v1411_v11 = vunpack.c.l.b16 %v530_v6 }
 0x1ff   :  { %3515 = vst [vmem:[#allocation16_spill] sm:$0xff] %v3213_v28  ;;  %v3215_v7 = vpop.f32.mrf.mxu0  ;;  %1651 = vmatmul.bf16.gmra.mxu1 %v3046_v53 }
 0x200   :  { %3516 = vst [vmem:[#allocation17_spill] sm:$0xff] %v3215_v7  ;;  %1700 = vmatmul.bf16.gmra.mxu2 %v3061_v8  ;;  %v528_v7 = vpack.c.bf16 %v3053_v2, %v3055_v5  ;;  %v1412_v8 = vunpack.c.h.b16 %v530_v6 }
 0x202   :  { %1602 = vmatmul.bf16.gmra.mxu0 %v3044_v33  ;;  %v529_v33 = vpack.c.bf16 %v3064_v10, %v3064_v10  ;;  %v1409_v51 = vunpack.c.h.b16 %v528_v7  ;;  %v1408_v43 = vunpack.c.l.b16 %v528_v7  ;;  %v3530_v7 = vpack.c.b16 %v2860_v34, %v2858_v32 }
 0x203   :  { %v3220_v17 = vpop.f32.mrf.mxu2 }
 0x204   :  { %3517 = vst [vmem:[#allocation18_spill] sm:$0xff] %v3220_v17  ;;  %v3222_v40 = vpop.f32.mrf.mxu1  ;;  %v1413_v17 = vunpack.c.l.b16 %v531_v9  ;;  %v1410_v0 = vunpack.c.l.b16 %v529_v33  ;;  %v1414_v10 = vpack.c.b16 %v1411_v11, %v1408_v43 }
 0x205   :  { %3518 = vst [vmem:[#allocation19_spill] sm:$0xff] %v3222_v40 }
 0x206   :  { %v3228_v1 = vpop.f32.mrf.mxu3  ;;  %v1416_v2 = vpack.c.b16 %v1413_v17, %v1410_v0 }
 0x207   :  { %3519 = vst [vmem:[#allocation20_spill] sm:$0xff] %v3228_v1  ;;  %v3232_v28 = vpop.f32.mrf.mxu0  ;;  %v1415_v1 = vpack.c.b16 %v1412_v8, %v1409_v51 }
 0x208   :  { %3520 = vst [vmem:[#allocation21_spill] sm:$0xff] %v3232_v28 }
 0x20b   :  { %v3236_v40 = vpop.f32.mrf.mxu2  ;;  %993 = vmatmul.bf16.gmra.mxu3 %v3046_v53 }
 0x20c   :  { %3521 = vst [vmem:[#allocation22_spill] sm:$0xff] %v3236_v40  ;;  %v3239_v12 = vpop.f32.mrf.mxu1 }
 0x20d   :  { %3522 = vst [vmem:[#allocation23_spill] sm:$0xff] %v3239_v12 }
 0x20e   :  { %v3241_v31 = vpop.f32.mrf.mxu3 }
 0x20f   :  { %3523 = vst [vmem:[#allocation24_spill] sm:$0xff] %v3241_v31  ;;  %v3243_v5 = vpop.f32.mrf.mxu0  ;;  %1656 = vmatmul.bf16.gmra.mxu1 %v1415_v1 }
 0x210   :  { %3524 = vst [vmem:[#allocation25_spill] sm:$0xff] %v3243_v5  ;;  %1705 = vmatmul.bf16.gmra.mxu2 %v1416_v2 }
 0x212   :  { %1607 = vmatmul.bf16.gmra.mxu0 %v1414_v10 }
 0x213   :  { %v3245_v9 = vpop.f32.mrf.mxu2 }
 0x214   :  { %3525 = vst [vmem:[#allocation26_spill] sm:$0xff] %v3245_v9  ;;  %v3247_v40 = vpop.f32.mrf.mxu1 }
 0x215   :  { %3526 = vst [vmem:[#allocation27_spill] sm:$0xff] %v3247_v40 }
 0x216   :  { %v3249_v53 = vpop.f32.mrf.mxu3 }
 0x217   :  { %3527 = vst [vmem:[#allocation28_spill] sm:$0xff] %v3249_v53  ;;  %v3251_v6 = vpop.f32.mrf.mxu0 }
 0x218   :  { %3528 = vst [vmem:[#allocation29_spill] sm:$0xff] %v3251_v6 }
 0x21b   :  { %v3253_v33 = vpop.f32.mrf.mxu2  ;;  %1314 = vmatmul.bf16.vlgmr.msra.gmra.mxu3 %v3530_v7 }
 0x21c   :  { %3529 = vst [vmem:[#allocation30_spill] sm:$0xff] %v3253_v33  ;;  %v1622_v51 = vpop.f32.mrf.mxu1 }
 0x21e   :  { %v959_v17 = vpop.f32.mrf.mxu3 }
 0x21f   :  { %v1573_v1 = vpop.f32.mrf.mxu0 }
 0x220   :  { %v1623_v8 = vadd.f32 %v1622_v51, %v1573_v1 }
 0x223   :  { %v1671_v43 = vpop.f32.mrf.mxu2 }
 0x224   :  { %v3258_v0 = vadd.f32 %v1671_v43, %v1623_v8  ;;  %v1624_v11 = vpop.f32.mrf.mxu1 }
 0x226   :  { %v961_v2 = vpop.f32.mrf.mxu3 }
 0x227   :  { %v1575_v10 = vpop.f32.mrf.mxu0 }
 0x228   :  { %v1625_v40 = vadd.f32 %v1624_v11, %v1575_v10 }
 0x22b   :  { %v1673_v9 = vpop.f32.mrf.mxu2  ;;  %1319 = vmatmul.bf16.gmra.mxu3 %v2873_v59 }
 0x22c   :  { %v3261_v6 = vadd.f32 %v1673_v9, %v1625_v40  ;;  %v1627_v33 = vpop.f32.mrf.mxu1 }
 0x22e   :  { %v964_v12 = vpop.f32.mrf.mxu3 }
 0x22f   :  { %v1578_v32 = vpop.f32.mrf.mxu0 }
 0x230   :  { %v1628_v34 = vadd.f32 %v1627_v33, %v1578_v32 }
 0x233   :  { %v1676_v7 = vpop.f32.mrf.mxu2 }
 0x234   :  { %v3263_v53 = vadd.f32 %v1676_v7, %v1628_v34  ;;  %v1629_v51 = vpop.f32.mrf.mxu1 }
 0x236   :  { %v966_v1 = vpop.f32.mrf.mxu3 }
 0x237   :  { %v1580_v8 = vpop.f32.mrf.mxu0 }
 0x238   :  { %v1630_v43 = vadd.f32 %v1629_v51, %v1580_v8 }
 0x23b   :  { %v1678_v5 = vpop.f32.mrf.mxu2  ;;  %1324 = vmatmul.bf16.gmra.mxu3 %v2885_v15 }
 0x23c   :  { %v3266_v11 = vadd.f32 %v1678_v5, %v1630_v43  ;;  %v1632_v10 = vpop.f32.mrf.mxu1 }
 0x23e   :  { %v3268_v59 = vpop.f32.mrf.mxu3 }
 0x23f   :  { %v1583_v40 = vpop.f32.mrf.mxu0 }
 0x240   :  { %v1633_v9 = vadd.f32 %v1632_v10, %v1583_v40 }
 0x243   :  { %v1681_v31 = vpop.f32.mrf.mxu2 }
 0x244   :  { %v3270_v28 = vadd.f32 %v1681_v31, %v1633_v9  ;;  %v1634_v32 = vpop.f32.mrf.mxu1  ;;  %v960_v9 = vadd.f32 %v959_v17, %v3078_v19  ;;  %v1788_v19 = vld [vmem:[%s3498_s4 + $0x58] sm:$0xff] }
 0x246   :  { %v3272_v33 = vpop.f32.mrf.mxu3 }
 0x247   :  { %v1585_v34 = vpop.f32.mrf.mxu0 }
 0x248   :  { %v1635_v7 = vadd.f32 %v1634_v32, %v1585_v34  ;;  %v1009_v32 = vadd.f32 %v3080_v21, %v960_v9  ;;  %v1789_v34 = vld [vmem:[%s3498_s4 + $0x60] sm:$0xff] }
 0x24b   :  { %v1683_v55 = vpop.f32.mrf.mxu2  ;;  %1329 = vmatmul.bf16.gmra.mxu3 %v2898_v39  ;;  %v1792_v39 = vld [vmem:[%s3498_s4 + $0x78] sm:$0xff] }
 0x24c   :  { %v3275_v51 = vadd.f32 %v1683_v55, %v1635_v7  ;;  %1797 = vmatpush.msrb.mxu3 %v1792_v39  ;;  %v1218_v39 = vadd.f32 %v3076_v18, %v1009_v32  ;;  %v967_v32 = vadd.f32 %v966_v1, %v3112_v36 }
 0x24e   :  { %v3277_v15 = vpop.f32.mrf.mxu3 }
 0x256   :  { %v3279_v5 = vpop.f32.mrf.mxu3 }
 0x25b   :  { %1334 = vmatmul.bf16.gmra.mxu3 %v2911_v58  ;;  %v1791_v58 = vld [vmem:[%s3498_s4 + $0x70] sm:$0xff] }
 0x25c   :  { %1798 = vmatpush.msrb.mxu3 %v1791_v58 }
 0x25e   :  { %v3282_v8 = vpop.f32.mrf.mxu3 }
 0x266   :  { %v3284_v31 = vpop.f32.mrf.mxu3 }
 0x26b   :  { %1339 = vmatmul.bf16.gmra.mxu3 %v2936_v20  ;;  %v1790_v20 = vld [vmem:[%s3498_s4 + $0x68] sm:$0xff] }
 0x26c   :  { %1799 = vmatpush.msrb.mxu3 %v1790_v20  ;;  %v965_v20 = vadd.f32 %v964_v12, %v3101_v3  ;;  %v1016_v12 = vadd.f32 %v3114_v38, %v967_v32 }
 0x26e   :  { %v3287_v43 = vpop.f32.mrf.mxu3  ;;  %1800 = vmatpush.msrb.mxu3 %v1789_v34 }
 0x270   :  { %1801 = vmatpush.msrb.mxu3 %v1788_v19  ;;  %v972_v19 = vadd.f32 %v3272_v33, %v3135_v48  ;;  %v1784_v48 = vld [vmem:[%s3498_s4 + $0x38] sm:$0xff] }
 0x276   :  { %v3289_v10 = vpop.f32.mrf.mxu3 }
 0x27b   :  { %1344 = vmatmul.bf16.gmra.mxu3 %v2993_v62 }
 0x27e   :  { %v3295_v55 = vpop.f32.mrf.mxu3 }
 0x286   :  { %v3300_v40 = vpop.f32.mrf.mxu3 }
 0x28b   :  { %1349 = vmatmul.bf16.gmra.mxu3 %v3041_v22  ;;  %v962_v22 = vadd.f32 %v961_v2, %v3089_v25  ;;  %v1014_v25 = vadd.f32 %v3103_v35, %v965_v20 }
 0x28d   :  { %v1011_v58 = vadd.f32 %v3091_v26, %v962_v22  ;;  %v1223_v3 = vadd.f32 %v3099_v30, %v1014_v25  ;;  %v970_v22 = vadd.f32 %v3268_v59, %v3124_v23  ;;  %v1637_v23 = vpop.f32.mrf.mxu1  ;;  %v3357_v59 = vld [vmem:[%s3497_s3] ss:$0 sm:$0xff] }
 0x28e   :  { %v3306_v62 = vpop.f32.mrf.mxu3 }
 0x28f   :  { %3531 = vst [vmem:[#allocation31_spill] sm:$0xff] %v3306_v62  ;;  %v1267_v62 = vadd.f32 %v3085_v24, %v1218_v39  ;;  %v1220_v34 = vadd.f32 %v3087_v13, %v1011_v58  ;;  %v1787_v24 = vld [vmem:[%s3498_s4 + $0x50] sm:$0xff]  ;;  %v1272_v13 = vadd.f32 %v3108_v29, %v1223_v3  ;;  %v1019_v30 = vadd.f32 %v3126_v45, %v970_v22  ;;  %v1785_v39 = vld [vmem:[%s3498_s4 + $0x40] sm:$0xff]  ;;  %v1588_v58 = vpop.f32.mrf.mxu0  ;;  %v1686_v45 = vpop.f32.mrf.mxu2 }
 0x290   :  { %1802 = vmatpush.msrb.mxu3 %v1787_v24 }
 0x291   :  { %v1269_v18 = vadd.f32 %v3093_v27, %v1220_v34  ;;  %v1786_v27 = vld [vmem:[%s3498_s4 + $0x48] sm:$0xff] }
 0x292   :  { %1803 = vmatpush.msrb.mxu3 %v1786_v27 }
 0x294   :  { %1804 = vmatpush.msrb.mxu3 %v1785_v39 }
 0x295   :  { %v1639_v25 = vpop.f32.mrf.mxu1 }
 0x296   :  { %v3313_v7 = vpop.f32.mrf.mxu3  ;;  %1805 = vmatpush.msrb.mxu3 %v1784_v48 }
 0x297   :  { %v1590_v34 = vpop.f32.mrf.mxu0 }
 0x29d   :  { %v3385_v27 = vpop.f32.mrf.mxu1 }
 0x29e   :  { %v1315_v21 = vpop.f32.mrf.mxu3 }
 0x29f   :  { %v1316_v17 = vadd.f32 %v1315_v21, %v1267_v62 }
 0x2a1   :  { %v1711_v9 = vadd.f32 %v3258_v0, %v1316_v17 }
 0x2a6   :  { %v1317_v26 = vpop.f32.mrf.mxu3 }
 0x2a7   :  { %v1318_v2 = vadd.f32 %v1317_v26, %v1269_v18  ;;  %v1688_v18 = vpop.f32.mrf.mxu2 }
 0x2a9   :  { %v1712_v62 = vadd.f32 %v3261_v6, %v1318_v2  ;;  %v1225_v6 = vadd.f32 %v3110_v37, %v1016_v12  ;;  %v1228_v37 = vadd.f32 %v3122_v44, %v1019_v30  ;;  %v975_v44 = vadd.f32 %v3277_v15, %v3147_v47 }
 0x2ab   :  { %v1274_v38 = vadd.f32 %v3116_v42, %v1225_v6  ;;  %v1021_v42 = vadd.f32 %v3137_v49, %v972_v19  ;;  %v1277_v21 = vadd.f32 %v3131_v46, %v1228_v37  ;;  %v1024_v26 = vadd.f32 %v3149_v54, %v975_v44 }
 0x2ac   :  { %v1732_v15 = vadd.f32 %v3357_v59, %v1712_v62 }
 0x2ad   :  { %v1230_v33 = vadd.f32 %v3133_v56, %v1021_v42  ;;  %v977_v56 = vadd.f32 %v3279_v5, %v3158_v60 }
 0x2ae   :  { %v1320_v35 = vpop.f32.mrf.mxu3  ;;  %v1748_v22 = vmax.f32 %v1732_v15, 0.0 }
 0x2af   :  { %v1321_v0 = vadd.f32 %v1320_v35, %v1272_v13  ;;  %v1279_v32 = vadd.f32 %v3139_v50, %v1230_v33  ;;  %v1638_v13 = vadd.f32 %v1637_v23, %v1588_v58  ;;  %v3382_v35 = vpop.f32.mrf.mxu0  ;;  %v3388_v60 = vpop.f32.mrf.mxu2 }
 0x2b1   :  { %v1713_v36 = vadd.f32 %v3263_v53, %v1321_v0  ;;  %v1026_v0 = vadd.f32 %v3160_v61, %v977_v56  ;;  %v1687_v62 = vadd.f32 %v1686_v45, %v1638_v13  ;;  %v3533_v56 = vld [vmem:[#allocation9_spill] sm:$0xff] }
 0x2b2   :  { %v3535_v13 = vld [vmem:[#allocation13_spill] sm:$0xff] }
 0x2b3   :  { %v1733_v61 = vadd.f32 %v3357_v59, %v1713_v36  ;;  %v1781_v36 = vld [vmem:[%s3498_s4 + $0x20] sm:$0xff] }
 0x2b5   :  { %v1749_v58 = vmax.f32 %v1733_v61, 0.0  ;;  %v3539_v61 = vld [vmem:[#allocation16_spill] sm:$0xff] }
 0x2b6   :  { %v1322_v1 = vpop.f32.mrf.mxu3 }
 0x2b7   :  { %v1323_v29 = vadd.f32 %v1322_v1, %v1274_v38  ;;  %v1782_v38 = vld [vmem:[%s3498_s4 + $0x28] sm:$0xff]  ;;  %v3399_v37 = vpop.f32.mrf.mxu0 }
 0x2b9   :  { %v3350_v53 = vadd.f32 %v3266_v11, %v1323_v29  ;;  %v1731_v11 = vadd.f32 %v3357_v59, %v1711_v9  ;;  %v1233_v9 = vadd.f32 %v3145_v52, %v1024_v26  ;;  %v1235_v29 = vadd.f32 %v3156_v16, %v1026_v0  ;;  %v3406_v16 = vpop.f32.mrf.mxu2 }
 0x2ba   :  { %v985_v26 = vadd.f32 %v3287_v43, %v3193_v41 }
 0x2bb   :  { %v1747_v2 = vmax.f32 %v1731_v11, 0.0  ;;  %v1282_v30 = vadd.f32 %v3154_v57, %v1233_v9  ;;  %v1640_v57 = vadd.f32 %v1639_v25, %v1590_v34  ;;  %v1284_v23 = vadd.f32 %v3162_v63, %v1235_v29  ;;  %v1780_v25 = vld [vmem:[%s3498_s4 + $0x18] sm:$0xff]  ;;  %v3534_v9 = vld [vmem:[#allocation3_spill] sm:$0xff] }
 0x2bc   :  { %v1734_v48 = vadd.f32 %v3357_v59, %v3350_v53  ;;  %v1034_v53 = vadd.f32 %v3195_v14, %v985_v26 }
 0x2bd   :  { %v1689_v42 = vadd.f32 %v1688_v18, %v1640_v57 }
 0x2be   :  { %v1325_v17 = vpop.f32.mrf.mxu3  ;;  %v1750_v11 = vmax.f32 %v1734_v48, 0.0  ;;  %v1243_v15 = vadd.f32 %v3533_v56, %v1034_v53  ;;  %v3545_v53 = vld [vmem:[#allocation5_spill] sm:$0xff] }
 0x2bf   :  { %v1326_v20 = vadd.f32 %v1325_v17, %v1277_v21  ;;  %v3401_v21 = vpop.f32.mrf.mxu1 }
 0x2c1   :  { %v1715_v49 = vadd.f32 %v3270_v28, %v1326_v20  ;;  %v1783_v28 = vld [vmem:[%s3498_s4 + $0x30] sm:$0xff] }
 0x2c2   :  { %1806 = vmatpush.msrb.mxu3 %v1783_v28 }
 0x2c3   :  { %v1735_v46 = vadd.f32 %v3357_v59, %v1715_v49 }
 0x2c4   :  { %1807 = vmatpush.msrb.mxu3 %v1782_v38 }
 0x2c5   :  { %v1751_v24 = vmax.f32 %v1735_v46, 0.0  ;;  %v1598_v46 = vpop.f32.mrf.mxu0 }
 0x2c6   :  { %v1327_v3 = vpop.f32.mrf.mxu3  ;;  %1808 = vmatpush.msrb.mxu3 %v1781_v36 }
 0x2c7   :  { %v3371_v12 = vmax.f32 %v1747_v2, %v1751_v24  ;;  %v1328_v47 = vadd.f32 %v1327_v3, %v1279_v32  ;;  %v1647_v18 = vpop.f32.mrf.mxu1  ;;  %v1696_v2 = vpop.f32.mrf.mxu2  ;;  %v980_v32 = vadd.f32 %v3282_v8, %v3170_v4  ;;  %v1779_v3 = vld [vmem:[%s3498_s4 + $0x10] sm:$0xff]  ;;  %v1778_v8 = vld [vmem:[%s3498_s4 + $0x8] sm:$0xff] }
 0x2c8   :  { %1809 = vmatpush.msrb.mxu3 %v1780_v25  ;;  %v1648_v14 = vadd.f32 %v1647_v18, %v1598_v46 }
 0x2c9   :  { %v1716_v54 = vadd.f32 %v3275_v51, %v1328_v47  ;;  %v3532_v47 = vld [vmem:[#allocation12_spill] sm:$0xff]  ;;  %v1029_v41 = vadd.f32 %v3534_v9, %v980_v32 }
 0x2ca   :  { %1810 = vmatpush.msrb.mxu3 %v1779_v3  ;;  %v987_v28 = vadd.f32 %v3289_v10, %v3532_v47 }
 0x2cb   :  { %v1736_v50 = vadd.f32 %v3357_v59, %v1716_v54 }
 0x2cc   :  { %v1036_v0 = vadd.f32 %v3535_v13, %v987_v28  ;;  %1811 = vmatpush.msrb.mxu3 %v1778_v8 }
 0x2cd   :  { %v1752_v6 = vmax.f32 %v1736_v50, 0.0  ;;  %v1600_v54 = vpop.f32.mrf.mxu0 }
 0x2ce   :  { %v1330_v5 = vpop.f32.mrf.mxu3 }
 0x2cf   :  { %v3390_v51 = vmax.f32 %v1748_v22, %v1752_v6  ;;  %v1331_v52 = vadd.f32 %v1330_v5, %v1282_v30  ;;  %v1649_v43 = vpop.f32.mrf.mxu1  ;;  %v1698_v50 = vpop.f32.mrf.mxu2  ;;  %v3536_v22 = vld [vmem:[#allocation10_spill] sm:$0xff]  ;;  %v1697_v5 = vadd.f32 %v1696_v2, %v1648_v14 }
 0x2d0   :  { %v1292_v4 = vadd.f32 %v3536_v22, %v1243_v15  ;;  %v3537_v30 = vld [vmem:[#allocation6_spill] sm:$0xff]  ;;  %v3547_v15 = vld [vmem:[#allocation15_spill] sm:$0xff] }
 0x2d1   :  { %v1717_v1 = vadd.f32 %v1687_v62, %v1331_v52  ;;  %v982_v10 = vadd.f32 %v3284_v31, %v3537_v30  ;;  %v3538_v62 = vld [vmem:[#allocation2_spill] sm:$0xff]  ;;  %v1650_v31 = vadd.f32 %v1649_v43, %v1600_v54 }
 0x2d2   :  { %v1238_v52 = vadd.f32 %v3538_v62, %v1029_v41  ;;  %v1777_v54 = vld [vmem:[%s3498_s4] sm:$0xff] }
 0x2d3   :  { %v1737_v39 = vadd.f32 %v3357_v59, %v1717_v1  ;;  %v990_v1 = vadd.f32 %v3295_v55, %v3539_v61  ;;  %v3544_v55 = vld [vmem:[#allocation14_spill] sm:$0xff]  ;;  %v1699_v2 = vadd.f32 %v1698_v50, %v1650_v31  ;;  %1812 = vmatpush.msrb.mxu3 %v1777_v54  ;;  %v3549_v50 = vld [vmem:[#allocation21_spill] sm:$0xff]  ;;  %v3552_v61 = vld [vmem:[#allocation24_spill] sm:$0xff] }
 0x2d4   :  { %v3550_v22 = vld [vmem:[#allocation18_spill] sm:$0xff] }
 0x2d5   :  { %v1753_v19 = vmax.f32 %v1737_v39, 0.0  ;;  %v3540_v39 = vld [vmem:[#allocation11_spill] sm:$0xff]  ;;  %v1603_v36 = vpop.f32.mrf.mxu0 }
 0x2d6   :  { %v1332_v45 = vpop.f32.mrf.mxu3  ;;  %v1245_v57 = vadd.f32 %v3540_v39, %v1036_v0 }
 0x2d7   :  { %v1764_v17 = vmax.f32 %v1749_v58, %v1753_v19  ;;  %v1333_v20 = vadd.f32 %v1332_v45, %v1284_v23  ;;  %v3541_v58 = vld [vmem:[#allocation7_spill] sm:$0xff]  ;;  %v3542_v23 = vld [vmem:[#allocation4_spill] sm:$0xff]  ;;  %v1652_v48 = vpop.f32.mrf.mxu1  ;;  %v1701_v18 = vpop.f32.mrf.mxu2 }
 0x2d8   :  { %v1031_v19 = vadd.f32 %v3541_v58, %v982_v10  ;;  %v1287_v45 = vadd.f32 %v3542_v23, %v1238_v52  ;;  %v1294_v25 = vadd.f32 %v3544_v55, %v1245_v57  ;;  %v1653_v43 = vadd.f32 %v1652_v48, %v1603_v36  ;;  %v3554_v23 = vld [vmem:[#allocation22_spill] sm:$0xff] }
 0x2d9   :  { %v1718_v44 = vadd.f32 %v1689_v42, %v1333_v20  ;;  %v1643_v20 = vadd.f32 %v3385_v27, %v3382_v35  ;;  %v3546_v35 = vld [vmem:[#allocation20_spill] sm:$0xff] }
 0x2da   :  { %v1240_v32 = vadd.f32 %v3545_v53, %v1031_v19  ;;  %v992_v27 = vadd.f32 %v3300_v40, %v3546_v35  ;;  %v1702_v10 = vadd.f32 %v1701_v18, %v1653_v43  ;;  %v3557_v18 = vld [vmem:[#allocation23_spill] sm:$0xff] }
 0x2db   :  { %v1738_v63 = vadd.f32 %v3357_v59, %v1718_v44  ;;  %v3543_v44 = vld [vmem:[#allocation17_spill] sm:$0xff]  ;;  %v1692_v46 = vadd.f32 %v3388_v60, %v1643_v20  ;;  %v3548_v60 = vld [vmem:[#allocation8_spill] sm:$0xff] }
 0x2dc   :  { %v1289_v9 = vadd.f32 %v3548_v60, %v1240_v32  ;;  %v1041_v14 = vadd.f32 %v3549_v50, %v992_v27 }
 0x2dd   :  { %v1754_v49 = vmax.f32 %v1738_v63, 0.0  ;;  %v1039_v63 = vadd.f32 %v3543_v44, %v990_v1  ;;  %v1605_v8 = vpop.f32.mrf.mxu0  ;;  %v3553_v1 = vld [vmem:[#allocation31_spill] sm:$0xff] }
 0x2de   :  { %v1335_v33 = vpop.f32.mrf.mxu3 }
 0x2df   :  { %v3411_v34 = vmax.f32 %v1750_v11, %v1754_v49  ;;  %v1336_v11 = vadd.f32 %v1335_v33, %v1287_v45  ;;  %v1248_v33 = vadd.f32 %v3547_v15, %v1039_v63  ;;  %v1654_v52 = vpop.f32.mrf.mxu1 }
 0x2e0   :  { %v1655_v19 = vadd.f32 %v1654_v52, %v1605_v8 }
 0x2e1   :  { %v1719_v28 = vadd.f32 %v1692_v46, %v1336_v11 }
 0x2e3   :  { %v1739_v40 = vadd.f32 %v3357_v59, %v1719_v28 }
 0x2e5   :  { %v1755_v39 = vmax.f32 %v1739_v40, 0.0  ;;  %v1608_v11 = vpop.f32.mrf.mxu0 }
 0x2e6   :  { %v1337_v24 = vpop.f32.mrf.mxu3 }
 0x2e7   :  { %v1338_v13 = vadd.f32 %v1337_v24, %v1289_v9 }
 0x2ed   :  { %v1610_v43 = vpop.f32.mrf.mxu0 }
 0x2ee   :  { %v1340_v6 = vpop.f32.mrf.mxu3 }
 0x2ef   :  { %v1341_v38 = vadd.f32 %v1340_v6, %v1292_v4  ;;  %v1297_v4 = vadd.f32 %v3550_v22, %v1248_v33  ;;  %v3561_v22 = vld [vmem:[#allocation30_spill] sm:$0xff] }
 0x2f1   :  { %v1721_v29 = vadd.f32 %v1697_v5, %v1341_v38  ;;  %v1703_v38 = vpop.f32.mrf.mxu2 }
 0x2f2   :  { %v1704_v48 = vadd.f32 %v1703_v38, %v1655_v19 }
 0x2f3   :  { %v1741_v42 = vadd.f32 %v3357_v59, %v1721_v29  ;;  %v995_v29 = vadd.f32 %v3553_v1, %v3552_v61  ;;  %v2468_v61 = vld [vmem:[%s3499_s5] ss:$0 sm:$0xff] }
 0x2f5   :  { %v1757_v49 = vmax.f32 %v1741_v42, 0.0 }
 0x2f6   :  { %v1342_v26 = vpop.f32.mrf.mxu3 }
 0x2f7   :  { %v3448_v3 = vmax.f32 %v1764_v17, %v1757_v49  ;;  %v1343_v47 = vadd.f32 %v1342_v26, %v1294_v25  ;;  %v1645_v17 = vadd.f32 %v3401_v21, %v3399_v37  ;;  %v3551_v37 = vld [vmem:[#allocation19_spill] sm:$0xff]  ;;  %v3556_v49 = vld [vmem:[#allocation28_spill] sm:$0xff] }
 0x2f8   :  { %v1250_v21 = vadd.f32 %v3551_v37, %v1041_v14  ;;  %v997_v55 = vadd.f32 %v3313_v7, %v3556_v49 }
 0x2f9   :  { %v1722_v56 = vadd.f32 %v1699_v2, %v1343_v47  ;;  %v1694_v30 = vadd.f32 %v3406_v16, %v1645_v17  ;;  %v3555_v16 = vld [vmem:[#allocation25_spill] sm:$0xff]  ;;  %v1657_v2 = vpop.f32.mrf.mxu1  ;;  %v1706_v53 = vpop.f32.mrf.mxu2 }
 0x2fa   :  { %v1299_v45 = vadd.f32 %v3554_v23, %v1250_v21  ;;  %v1044_v42 = vadd.f32 %v3555_v16, %v995_v29  ;;  %v3558_v47 = vld [vmem:[#allocation29_spill] sm:$0xff] }
 0x2fb   :  { %v1742_v41 = vadd.f32 %v3357_v59, %v1722_v56  ;;  %v1720_v24 = vadd.f32 %v1694_v30, %v1338_v13  ;;  %v1046_v35 = vadd.f32 %v3558_v47, %v997_v55  ;;  %v3559_v56 = vld [vmem:[#allocation26_spill] sm:$0xff] }
 0x2fc   :  { %v1253_v26 = vadd.f32 %v3557_v18, %v1044_v42 }
 0x2fd   :  { %v1758_v0 = vmax.f32 %v1742_v41, 0.0  ;;  %v1740_v20 = vadd.f32 %v3357_v59, %v1720_v24  ;;  %v3560_v41 = vld [vmem:[#allocation27_spill] sm:$0xff] }
 0x2fe   :  { %v1345_v6 = vpop.f32.mrf.mxu3  ;;  %v1302_v15 = vadd.f32 %v3559_v56, %v1253_v26  ;;  %v1255_v17 = vadd.f32 %v3560_v41, %v1046_v35 }
 0x2ff   :  { %v1773_v5 = vmax.f32 %v3411_v34, %v1758_v0  ;;  %v1346_v62 = vadd.f32 %v1345_v6, %v1297_v4  ;;  %v1765_v34 = vmax.f32 %v3371_v12, %v1755_v39  ;;  %v1756_v25 = vmax.f32 %v1740_v20, 0.0 }
 0x300   :  { %v1658_v12 = vadd.f32 %v1657_v2, %v1608_v11  ;;  %v1304_v4 = vadd.f32 %v3561_v22, %v1255_v17 }
 0x301   :  { %v1723_v57 = vadd.f32 %v1702_v10, %v1346_v62  ;;  %v1772_v27 = vmax.f32 %v3390_v51, %v1756_v25  ;;  %v1659_v14 = vpop.f32.mrf.mxu1  ;;  %v1708_v40 = vpop.f32.mrf.mxu2 }
 0x302   :  { %v1707_v54 = vadd.f32 %v1706_v53, %v1658_v12  ;;  %v1660_v13 = vadd.f32 %v1659_v14, %v1610_v43 }
 0x303   :  { %v1743_v58 = vadd.f32 %v3357_v59, %v1723_v57 }
 0x304   :  { %v1709_v8 = vadd.f32 %v1708_v40, %v1660_v13 }
 0x305   :  { %v1759_v31 = vmax.f32 %v1743_v58, 0.0 }
 0x306   :  { %v1347_v36 = vpop.f32.mrf.mxu3 }
 0x307   :  { %v1767_v44 = vmax.f32 %v1765_v34, %v1759_v31  ;;  %v1348_v63 = vadd.f32 %v1347_v36, %v1299_v45 }
 0x309   :  { %v1724_v46 = vadd.f32 %v1704_v48, %v1348_v63 }
 0x30b   :  { %v1744_v32 = vadd.f32 %v3357_v59, %v1724_v46 }
 0x30d   :  { %v1760_v28 = vmax.f32 %v1744_v32, 0.0 }
 0x30e   :  { %v1350_v33 = vpop.f32.mrf.mxu3 }
 0x30f   :  { %v1351_v60 = vadd.f32 %v1350_v33, %v1302_v15  ;;  %v1774_v7 = vmax.f32 %v1772_v27, %v1760_v28 }
 0x311   :  { %v1725_v9 = vadd.f32 %v1707_v54, %v1351_v60 }
 0x313   :  { %v1745_v50 = vadd.f32 %v3357_v59, %v1725_v9 }
 0x315   :  { %v1761_v0 = vmax.f32 %v1745_v50, 0.0 }
 0x316   :  { %v1352_v51 = vpop.f32.mrf.mxu3 }
 0x317   :  { %v1768_v6 = vmax.f32 %v3448_v3, %v1761_v0  ;;  %v1353_v30 = vadd.f32 %v1352_v51, %v1304_v4 }
 0x319   :  { %v1769_v10 = vmax.f32 %v1767_v44, %v1768_v6  ;;  %v1726_v62 = vadd.f32 %v1709_v8, %v1353_v30 }
 0x31b   :  { %v1746_v52 = vadd.f32 %v3357_v59, %v1726_v62  ;;  %1813 = vmatmul.f32.vlgmr.msrb.gmra.mxu3 %v1769_v10 }
 0x31d   :  { %v1762_v38 = vmax.f32 %v1746_v52, 0.0 }
 0x31f   :  { %v1775_v37 = vmax.f32 %v1773_v5, %v1762_v38 }
 0x321   :  { %v1776_v21 = vmax.f32 %v1774_v7, %v1775_v37 }
 0x323   :  { %1816 = vmatmul.f32.gmra.mxu3 %v1776_v21 }
 0x39e   :  { %v1814_v1 = vpop.f32.mrf.mxu3 }
 0x39f   :  { %v1815_v29 = vadd.f32 %v2468_v61, %v1814_v1 }
 0x3a1   :  { %1820 = vst [vmem:[%s3500_s6] sm:$0xff] %v1815_v29 }
 0x3a6   :  { %v1817_v3 = vpop.f32.mrf.mxu3 }
 0x3a7   :  { %v1818_v39 = vadd.f32 %v2468_v61, %v1817_v3 }
 0x3a9   :  { %1821 = vst [vmem:[%s3500_s6 + $0x8] sm:$0xff] %v1818_v39 }

</bundles_post_ra>
